<compile_context>
chip_gen: v6e
topology: v6e:2x2x1
jax: 0.10.0
libtpu: 0.0.40
codegen_flags: <defaults>
</compile_context>

<pallas_src>
import math

import jax
import jax.numpy as jnp
from jax.experimental import pallas as pl
from jax.experimental.pallas import tpu as pltpu

NEG_SLOPE = 0.2


def _leaky_relu(x):
    # one vmul + vmax instead of compare + select
    return jnp.maximum(x, NEG_SLOPE * x)


def discriminator_kernel(x_ref, w1_ref, b1_ref, w2_ref, b2_ref,
                         w3_ref, b3_ref, w4_ref, b4_ref, o_ref):
    # NOTE: when B % TB != 0 the trailing x block contains undefined padding
    # rows; the matching output rows fall outside [0, B) and are dropped by
    # Pallas, so this is benign.  Do NOT reduce across the batch dimension
    # inside this kernel.
    x = x_ref[...].astype(jnp.bfloat16)                                 # [TB, d+q]

    h1 = jnp.dot(x, w1_ref[...], preferred_element_type=jnp.float32) + b1_ref[...]
    h1 = _leaky_relu(h1).astype(jnp.bfloat16)                           # [TB, 1024]

    h2 = jnp.dot(h1, w2_ref[...], preferred_element_type=jnp.float32) + b2_ref[...]
    h2 = _leaky_relu(h2).astype(jnp.bfloat16)                           # [TB, 512]

    h3 = jnp.dot(h2, w3_ref[...], preferred_element_type=jnp.float32) + b3_ref[...]
    h3 = _leaky_relu(h3)                                                # [TB, 256] f32

    # Final Linear(256, 1): an N=1 MXU matmul would waste 127/128 lanes; use a
    # VPU multiply + cross-lane reduce (XLU slot) and store the [TB, 1] column
    # directly (4 B/row, no padded slab, no broadcast_to).
    w4 = w4_ref[...].astype(jnp.float32)                                # [1, 256]
    o_ref[...] = jnp.sum(h3 * w4, axis=-1, keepdims=True) + b4_ref[...]  # [TB, 1]


def prepare_params(params):
    """One-time conversion of f32 params ([in,out] weights, [1,out] biases) into
    kernel-ready dtypes/layouts.  Call once and reuse across forward calls."""
    return {
        "w1": params["w1"].astype(jnp.bfloat16),
        "w2": params["w2"].astype(jnp.bfloat16),
        "w3": params["w3"].astype(jnp.bfloat16),
        "w4": jnp.transpose(params["w4"]).astype(jnp.bfloat16),   # [1, 256]
        "b1": params["b1"],
        "b2": params["b2"],
        "b3": params["b3"],
        "b4": params["b4"].reshape(1, 1),
    }


def _round_up(x, m):
    return ((x + m - 1) // m) * m


def _choose_batch_tile(B, tb):
    # Multiple of 8 sublanes, capped at `tb` (large tiles amortize the ~0.35 us
    # per-grid-step overhead).  If the whole batch would fit in a single tile
    # and is big enough, split it in two so both v7x TensorCores get work.
    TB = min(tb, _round_up(B, 8))
    if TB >= B and B >= 16:
        TB = min(TB, _round_up(pl.cdiv(B, 2), 8))
    return max(TB, 8)


def discriminator_forward(x, prepared, *, tb=1024):
    """x: [B, d+q] float32.  prepared: output of prepare_params()."""
    B, d_in = x.shape
    TB = _choose_batch_tile(B, tb)
    grid = (pl.cdiv(B, TB),)

    def resident(shape):
        # Constant index_map -> block stays VMEM-resident across grid steps
        # (one HBM load amortized over the whole batch).
        return pl.BlockSpec(shape, lambda i: (0,) * len(shape))

    return pl.pallas_call(
        discriminator_kernel,
        out_shape=jax.ShapeDtypeStruct((B, 1), jnp.float32),
        grid=grid,
        in_specs=[
            pl.BlockSpec((TB, d_in), lambda i: (i, 0)),      # x: batch-tiled, f32
            resident(prepared["w1"].shape), resident(prepared["b1"].shape),
            resident(prepared["w2"].shape), resident(prepared["b2"].shape),
            resident(prepared["w3"].shape), resident(prepared["b3"].shape),
            resident(prepared["w4"].shape), resident(prepared["b4"].shape),
        ],
        out_specs=pl.BlockSpec((TB, 1), lambda i: (i, 0)),
        compiler_params=pltpu.CompilerParams(
            dimension_semantics=("parallel",),   # megacore-shard the batch axis
            vmem_limit_bytes=32 << 20,
        ),
    )(x, prepared["w1"], prepared["b1"], prepared["w2"], prepared["b2"],
      prepared["w3"], prepared["b3"], prepared["w4"], prepared["b4"])


def xavier_uniform(key, out_features, in_features):
    # Matches torch.nn.init.xavier_uniform_ on a [out, in] weight (gain=1).
    bound = math.sqrt(6.0 / (in_features + out_features))
    return jax.random.uniform(key, (out_features, in_features),
                              dtype=jnp.float32, minval=-bound, maxval=bound)


def init_params(key, d, q):
    dims = [(d + q, 1024), (1024, 512), (512, 256), (256, 1)]
    keys = jax.random.split(key, len(dims))
    params = {}
    for i, ((fan_in, fan_out), k) in enumerate(zip(dims, keys), start=1):
        w_torch = xavier_uniform(k, fan_out, fan_in)            # [out, in] like PyTorch
        params[f"w{i}"] = jnp.transpose(w_torch)                # kernel wants [in, out]
        params[f"b{i}"] = jnp.zeros((1, fan_out), jnp.float32)  # constant_(bias, 0)
    return params


def reference_forward(x, params):
    # Pure-JAX reference mirroring the kernel's bf16/f32 mixed precision.
    h = x.astype(jnp.bfloat16)
    for i in (1, 2, 3):
        w = params[f"w{i}"].astype(jnp.bfloat16)
        h = jnp.dot(h, w, preferred_element_type=jnp.float32) + params[f"b{i}"]
        h = jnp.maximum(h, NEG_SLOPE * h)
        if i < 3:
            h = h.astype(jnp.bfloat16)
    w4 = jnp.transpose(params["w4"]).astype(jnp.bfloat16).astype(jnp.float32)  # [1, 256]
    return jnp.sum(h * w4, axis=-1, keepdims=True) + params["b4"].reshape(1, 1)


if __name__ == "__main__":
    d, q = 16, 16
    B = 8

    key = jax.random.PRNGKey(0)
    k_params, k_x = jax.random.split(key)

    params = init_params(k_params, d, q)
    prepared = prepare_params(params)        # one-time bf16 cast / w4 transpose
    x = jax.random.normal(k_x, (B, d + q), dtype=jnp.float32)

    fwd = jax.jit(discriminator_forward)
    out = jax.block_until_ready(fwd(x, prepared))

    ref = reference_forward(x, params)
    assert out.shape == (B, 1)
    assert jnp.allclose(out, ref, atol=1e-2, rtol=1e-2), "mismatch vs reference"

    print("KERNEL_OK")
</pallas_src>

<mosaic_0001>
module attributes {stable_mosaic.version = 11 : i64} {
  func.func @discriminator_kernel(%arg0: i32, %arg1: memref<8x32xf32, #tpu.memory_space<vmem>>, %arg2: memref<32x1024xbf16, #tpu.memory_space<vmem>>, %arg3: memref<1x1024xf32, #tpu.memory_space<vmem>>, %arg4: memref<1024x512xbf16, #tpu.memory_space<vmem>>, %arg5: memref<1x512xf32, #tpu.memory_space<vmem>>, %arg6: memref<512x256xbf16, #tpu.memory_space<vmem>>, %arg7: memref<1x256xf32, #tpu.memory_space<vmem>>, %arg8: memref<1x256xbf16, #tpu.memory_space<vmem>>, %arg9: memref<1x1xf32, #tpu.memory_space<vmem>>, %arg10: memref<8x1xf32, #tpu.memory_space<vmem>>) attributes {dimension_semantics = [#tpu.dimension_semantics<parallel>], iteration_bounds = array<i64: 1>, scalar_prefetch = 0 : i64, scratch_operands = 0 : i64, tpu.core_type = #tpu.core_type<tc>, window_params = [{transform_indices = @transform_0, window_bounds = array<i64: 8, 32>}, {pipeline_mode = #tpu.pipeline_mode<synchronous>, transform_indices = @transform_1, window_bounds = array<i64: 32, 1024>}, {pipeline_mode = #tpu.pipeline_mode<synchronous>, transform_indices = @transform_2, window_bounds = array<i64: 1, 1024>}, {pipeline_mode = #tpu.pipeline_mode<synchronous>, transform_indices = @transform_3, window_bounds = array<i64: 1024, 512>}, {pipeline_mode = #tpu.pipeline_mode<synchronous>, transform_indices = @transform_4, window_bounds = array<i64: 1, 512>}, {pipeline_mode = #tpu.pipeline_mode<synchronous>, transform_indices = @transform_5, window_bounds = array<i64: 512, 256>}, {pipeline_mode = #tpu.pipeline_mode<synchronous>, transform_indices = @transform_6, window_bounds = array<i64: 1, 256>}, {pipeline_mode = #tpu.pipeline_mode<synchronous>, transform_indices = @transform_7, window_bounds = array<i64: 1, 256>}, {pipeline_mode = #tpu.pipeline_mode<synchronous>, transform_indices = @transform_8, window_bounds = array<i64: 1, 1>}, {transform_indices = @transform_9, window_bounds = array<i64: 8, 1>}]} {
    %c0 = arith.constant 0 : index
    %c0_0 = arith.constant 0 : index
    %0 = vector.load %arg1[%c0, %c0_0] : memref<8x32xf32, #tpu.memory_space<vmem>>, vector<8x32xf32>
    %1 = arith.truncf %0 : vector<8x32xf32> to vector<8x32xbf16>
    %c0_1 = arith.constant 0 : index
    %c0_2 = arith.constant 0 : index
    %2 = vector.load %arg2[%c0_1, %c0_2] : memref<32x1024xbf16, #tpu.memory_space<vmem>>, vector<32x1024xbf16>
    %cst = arith.constant dense<0.000000e+00> : vector<8x1024xf32>
    %3 = tpu.matmul %1, %2, %cst {dimension_numbers = #tpu.dot_dimension_numbers<[1], [0], [0], [1], [0, 0, 1, 1], [], []>} : vector<8x32xbf16>, vector<32x1024xbf16>, vector<8x1024xf32> -> vector<8x1024xf32>
    %c0_3 = arith.constant 0 : index
    %c0_4 = arith.constant 0 : index
    %4 = vector.load %arg3[%c0_3, %c0_4] : memref<1x1024xf32, #tpu.memory_space<vmem>>, vector<1x1024xf32>
    %5 = vector.broadcast %4 : vector<1x1024xf32> to vector<8x1024xf32>
    %6 = arith.addf %3, %5 : vector<8x1024xf32>
    %cst_5 = arith.constant 2.000000e-01 : f32
    %7 = vector.broadcast %cst_5 : f32 to vector<8x1024xf32>
    %8 = arith.mulf %7, %6 : vector<8x1024xf32>
    %9 = arith.maximumf %6, %8 : vector<8x1024xf32>
    %10 = arith.truncf %9 : vector<8x1024xf32> to vector<8x1024xbf16>
    %c0_6 = arith.constant 0 : index
    %c0_7 = arith.constant 0 : index
    %11 = vector.load %arg4[%c0_6, %c0_7] : memref<1024x512xbf16, #tpu.memory_space<vmem>>, vector<1024x512xbf16>
    %cst_8 = arith.constant dense<0.000000e+00> : vector<8x512xf32>
    %12 = tpu.matmul %10, %11, %cst_8 {dimension_numbers = #tpu.dot_dimension_numbers<[1], [0], [0], [1], [0, 0, 1, 1], [], []>} : vector<8x1024xbf16>, vector<1024x512xbf16>, vector<8x512xf32> -> vector<8x512xf32>
    %c0_9 = arith.constant 0 : index
    %c0_10 = arith.constant 0 : index
    %13 = vector.load %arg5[%c0_9, %c0_10] : memref<1x512xf32, #tpu.memory_space<vmem>>, vector<1x512xf32>
    %14 = vector.broadcast %13 : vector<1x512xf32> to vector<8x512xf32>
    %15 = arith.addf %12, %14 : vector<8x512xf32>
    %cst_11 = arith.constant 2.000000e-01 : f32
    %16 = vector.broadcast %cst_11 : f32 to vector<8x512xf32>
    %17 = arith.mulf %16, %15 : vector<8x512xf32>
    %18 = arith.maximumf %15, %17 : vector<8x512xf32>
    %19 = arith.truncf %18 : vector<8x512xf32> to vector<8x512xbf16>
    %c0_12 = arith.constant 0 : index
    %c0_13 = arith.constant 0 : index
    %20 = vector.load %arg6[%c0_12, %c0_13] : memref<512x256xbf16, #tpu.memory_space<vmem>>, vector<512x256xbf16>
    %cst_14 = arith.constant dense<0.000000e+00> : vector<8x256xf32>
    %21 = tpu.matmul %19, %20, %cst_14 {dimension_numbers = #tpu.dot_dimension_numbers<[1], [0], [0], [1], [0, 0, 1, 1], [], []>} : vector<8x512xbf16>, vector<512x256xbf16>, vector<8x256xf32> -> vector<8x256xf32>
    %c0_15 = arith.constant 0 : index
    %c0_16 = arith.constant 0 : index
    %22 = vector.load %arg7[%c0_15, %c0_16] : memref<1x256xf32, #tpu.memory_space<vmem>>, vector<1x256xf32>
    %23 = vector.broadcast %22 : vector<1x256xf32> to vector<8x256xf32>
    %24 = arith.addf %21, %23 : vector<8x256xf32>
    %cst_17 = arith.constant 2.000000e-01 : f32
    %25 = vector.broadcast %cst_17 : f32 to vector<8x256xf32>
    %26 = arith.mulf %25, %24 : vector<8x256xf32>
    %27 = arith.maximumf %24, %26 : vector<8x256xf32>
    %c0_18 = arith.constant 0 : index
    %c0_19 = arith.constant 0 : index
    %28 = vector.load %arg8[%c0_18, %c0_19] : memref<1x256xbf16, #tpu.memory_space<vmem>>, vector<1x256xbf16>
    %29 = arith.extf %28 : vector<1x256xbf16> to vector<1x256xf32>
    %30 = vector.broadcast %29 : vector<1x256xf32> to vector<8x256xf32>
    %31 = arith.mulf %27, %30 : vector<8x256xf32>
    %cst_20 = arith.constant dense<0.000000e+00> : vector<8xf32>
    %32 = vector.multi_reduction <add>, %31, %cst_20 [1] : vector<8x256xf32> to vector<8xf32>
    %33 = vector.shape_cast %32 : vector<8xf32> to vector<8x1xf32>
    %c0_21 = arith.constant 0 : index
    %c0_22 = arith.constant 0 : index
    %34 = vector.load %arg9[%c0_21, %c0_22] : memref<1x1xf32, #tpu.memory_space<vmem>>, vector<1x1xf32>
    %35 = vector.broadcast %34 : vector<1x1xf32> to vector<8x1xf32>
    %36 = arith.addf %33, %35 : vector<8x1xf32>
    %c0_23 = arith.constant 0 : index
    %c0_24 = arith.constant 0 : index
    %37 = vector.load %arg10[%c0_23, %c0_24] : memref<8x1xf32, #tpu.memory_space<vmem>>, vector<8x1xf32>
    tpu.vector_store %arg10[%c0_23, %c0_24], %36 {strides = array<i32>} : memref<8x1xf32, #tpu.memory_space<vmem>>, vector<8x1xf32>,
    return
  }
  func.func @transform_0(%arg0: i32) -> (i32, i32) {
    %c0_i32 = arith.constant 0 : i32
    %c0_i32_0 = arith.constant 0 : i32
    return %arg0, %c0_i32 : i32, i32
  }
  func.func @transform_1(%arg0: i32) -> (i32, i32) {
    %c0_i32 = arith.constant 0 : i32
    %c0_i32_0 = arith.constant 0 : i32
    %c0_i32_1 = arith.constant 0 : i32
    return %c0_i32, %c0_i32_0 : i32, i32
  }
  func.func @transform_2(%arg0: i32) -> (i32, i32) {
    %c0_i32 = arith.constant 0 : i32
    %c0_i32_0 = arith.constant 0 : i32
    %c0_i32_1 = arith.constant 0 : i32
    return %c0_i32, %c0_i32_0 : i32, i32
  }
  func.func @transform_3(%arg0: i32) -> (i32, i32) {
    %c0_i32 = arith.constant 0 : i32
    %c0_i32_0 = arith.constant 0 : i32
    %c0_i32_1 = arith.constant 0 : i32
    return %c0_i32, %c0_i32_0 : i32, i32
  }
  func.func @transform_4(%arg0: i32) -> (i32, i32) {
    %c0_i32 = arith.constant 0 : i32
    %c0_i32_0 = arith.constant 0 : i32
    %c0_i32_1 = arith.constant 0 : i32
    return %c0_i32, %c0_i32_0 : i32, i32
  }
  func.func @transform_5(%arg0: i32) -> (i32, i32) {
    %c0_i32 = arith.constant 0 : i32
    %c0_i32_0 = arith.constant 0 : i32
    %c0_i32_1 = arith.constant 0 : i32
    return %c0_i32, %c0_i32_0 : i32, i32
  }
  func.func @transform_6(%arg0: i32) -> (i32, i32) {
    %c0_i32 = arith.constant 0 : i32
    %c0_i32_0 = arith.constant 0 : i32
    %c0_i32_1 = arith.constant 0 : i32
    return %c0_i32, %c0_i32_0 : i32, i32
  }
  func.func @transform_7(%arg0: i32) -> (i32, i32) {
    %c0_i32 = arith.constant 0 : i32
    %c0_i32_0 = arith.constant 0 : i32
    %c0_i32_1 = arith.constant 0 : i32
    return %c0_i32, %c0_i32_0 : i32, i32
  }
  func.func @transform_8(%arg0: i32) -> (i32, i32) {
    %c0_i32 = arith.constant 0 : i32
    %c0_i32_0 = arith.constant 0 : i32
    %c0_i32_1 = arith.constant 0 : i32
    return %c0_i32, %c0_i32_0 : i32, i32
  }
  func.func @transform_9(%arg0: i32) -> (i32, i32) {
    %c0_i32 = arith.constant 0 : i32
    %c0_i32_0 = arith.constant 0 : i32
    return %arg0, %c0_i32 : i32, i32
  }
}

</mosaic_0001>

<bundles_post_ra>
// kernel: discriminator_forward.1
= control target key start
LH: loop header
LB: loop body
LE: loop exit
PB: predicated region body
PF: predicated region fallthrough
CT: control target
= control target key end

     0   :  { %s3981_s0 = inlined_call_operand.hbm [shape: f32[8,32], index: 0, kind: input, shape index: {}]   ;;  %s3982_s1 = inlined_call_operand.hbm [shape: bf16[32,1024], index: 1, kind: input, shape index: {}]   ;;  %s3983_s2 = inlined_call_operand.hbm [shape: f32[1,1024], index: 2, kind: input, shape index: {}]   ;;  %s3984_s3 = inlined_call_operand.hbm [shape: bf16[1024,512], index: 3, kind: input, shape index: {}]   ;;  %s3985_s4 = inlined_call_operand.vmem [shape: f32[1,512], index: 4, kind: input, shape index: {}]   ;;  %s3986_s5 = inlined_call_operand.hbm [shape: bf16[512,256], index: 5, kind: input, shape index: {}]   ;;  %s3987_s6 = inlined_call_operand.vmem [shape: f32[1,256], index: 6, kind: input, shape index: {}]   ;;  %s3988_s7 = inlined_call_operand.vmem [shape: bf16[1,256], index: 7, kind: input, shape index: {}]   ;;  %s3989_s8 = inlined_call_operand.<no memory space> [shape: f32[1,1], index: 8, kind: input, shape index: {}]   ;;  %s3990_s9 = inlined_call_operand.vmem [shape: f32[8,1], index: 9, kind: output, shape index: {}]  }
   0x1   :  { %v14_v0 = vstv %s3989_s8 }
   0x2   :  { %15 = vst [vmem:[#allocation2] sm:$0x1] %v14_v0 }
   0x3   :  { %16 = vsyncpa [#allocation4], 0 }
   0x4   :  { %17 = vsyncpa [#allocation6], 0 }
   0x5   :  { %18 = vsyncpa [#allocation9], 0  ;;  %s3793_s11 = smov [#allocation5]  }
   0x6   :  { %s34_s12 = sshll.u32 %s3793_s11, 4  ;;  %s35_s12 = int_to_ptr.vmem [resolvable:$true] %s34_s12 }
   0x7   :  { %s3695_s13 = scalar_lea.vmem %s35_s12, 2048  ;;  %p3700_p1 = scmp.lt.s32.totalorder %s35_s12, %s35_s12 }
   0x8   :  { %p3696_p0 = scmp.ne.s32.totalorder %s35_s12, %s3695_s13  ;;  %p3701_p2 = scmp.lt.s32.totalorder %s3695_s13, %s3695_s13 }
   0xa   :  { %p3702_p3 = por %p3701_p2, %p3700_p1 }
   0xc   :  { %p3703_p4 = pnand %p3702_p3, %p3696_p0 }
   0xe   :  { %3706 = shalt.err (!%p3703_p4)
}
   0xf   :  { %s3794_s14 = smov 512   ;;  %s3795_s15 = smov 32  }
  0x10   :  { %40 = dma.hbm_to_vmem [thread:$0]  %s3982_s1, 2048, %s35_s12, [#allocation6], %s3794_s14, %s3794_s14, %s3795_s15  }
  0x11   :  { %s3796_s8 = smov [#allocation8]  }
  0x12   :  { %s56_s18 = sshll.u32 %s3796_s8, 4  ;;  %s57_s18 = int_to_ptr.vmem [resolvable:$true] %s56_s18 }
  0x13   :  { %s3715_s19 = scalar_lea.vmem %s57_s18, 32768  ;;  %p3720_p6 = scmp.lt.s32.totalorder %s57_s18, %s57_s18 }
  0x14   :  { %p3716_p5 = scmp.ne.s32.totalorder %s57_s18, %s3715_s19  ;;  %p3721_p7 = scmp.lt.s32.totalorder %s3715_s19, %s3715_s19 }
  0x16   :  { %p3722_p8 = por %p3721_p7, %p3720_p6 }
  0x18   :  { %p3723_p9 = pnand %p3722_p8, %p3716_p5 }
  0x1a   :  { %3726 = shalt.err (!%p3723_p9)
}
  0x1b   :  { %s3797_s20 = smov 256   ;;  %s3798_s21 = smov 16  }
  0x1c   :  { %62 = dma.hbm_to_vmem [thread:$0]  %s3984_s3, 32768, %s57_s18, [#allocation9], %s3797_s20, %s3797_s20, %s3798_s21  }
  0x1d   :  { %s3799_s24 = smov [#allocation3]   ;;  %s3800_s26 = smov [#allocation7]  }
  0x1e   :  { %s25_s25 = sshll.u32 %s3799_s24, 4  ;;  %s47_s1 = sshll.u32 %s3800_s26, 4  ;;  %s26_s25 = int_to_ptr.vmem [resolvable:$true] %s25_s25  ;;  %s48_s1 = int_to_ptr.vmem [resolvable:$true] %s47_s1 }
  0x1f   :  { %s3735_s27 = scalar_lea.vmem %s26_s25, 128  ;;  %p3740_p11 = scmp.lt.s32.totalorder %s26_s25, %s26_s25 }
  0x20   :  { %p3736_p10 = scmp.ne.s32.totalorder %s26_s25, %s3735_s27  ;;  %p3741_p12 = scmp.lt.s32.totalorder %s3735_s27, %s3735_s27 }
  0x22   :  { %p3742_p13 = por %p3741_p12, %p3740_p11 }
  0x24   :  { %p3743_p0 = pnand %p3742_p13, %p3736_p10 }
  0x26   :  { %3746 = shalt.err (!%p3743_p0)
}
  0x27   :  { %28 = dma.hbm_to_vmem [thread:$0]  %s3981_s0, 128, %s26_s25, [#allocation4]  }
  0x28   :  { %s3755_s30 = scalar_lea.vmem %s48_s1, 128  ;;  %p3760_p2 = scmp.lt.s32.totalorder %s48_s1, %s48_s1 }
  0x29   :  { %p3756_p1 = scmp.ne.s32.totalorder %s48_s1, %s3755_s30  ;;  %p3761_p3 = scmp.lt.s32.totalorder %s3755_s30, %s3755_s30 }
  0x2b   :  { %p3762_p4 = por %p3761_p3, %p3760_p2 }
  0x2d   :  { %p3763_p5 = pnand %p3762_p4, %p3756_p1 }
  0x2f   :  { %3766 = shalt.err (!%p3763_p5)
}
  0x30   :  { %50 = dma.hbm_to_vmem [thread:$0]  %s3983_s2, 128, %s48_s1, [#allocation6]  }
  0x31   :  { %s3801_s11 = smov [#allocation10]  }
  0x32   :  { %s70_s12 = sshll.u32 %s3801_s11, 4  ;;  %s71_s12 = int_to_ptr.vmem [resolvable:$true] %s70_s12 }
  0x33   :  { %s3775_s13 = scalar_lea.vmem %s71_s12, 8192  ;;  %p3780_p7 = scmp.lt.s32.totalorder %s71_s12, %s71_s12 }
  0x34   :  { %p3776_p6 = scmp.ne.s32.totalorder %s71_s12, %s3775_s13  ;;  %p3781_p8 = scmp.lt.s32.totalorder %s3775_s13, %s3775_s13 }
  0x36   :  { %p3782_p9 = por %p3781_p8, %p3780_p7 }
  0x38   :  { %p3783_p10 = pnand %p3782_p9, %p3776_p6 }
  0x3a   :  { %3786 = shalt.err (!%p3783_p10)
}
  0x3b   :  { %s3802_s0 = smov 128   ;;  %s3803_s14 = smov 8  }
  0x3c   :  { %76 = dma.hbm_to_vmem [thread:$0]  %s3986_s5, 8192, %s71_s12, [#allocation9], %s3802_s0, %s3802_s0, %s3803_s14  }
  0x3d   :  { %3787 = dma.done.wait [#allocation4], 128  }
  0x3e   :  { %3788 = vsyncadd [#allocation4], 4294967168 }
  0x3f   :  { %3789 = dma.done.wait [#allocation6], 2176  }
  0x40   :  { %3790 = vsyncadd [#allocation6], 4294965120 }
  0x41   :  { %3791 = dma.done.wait [#allocation9], 40960  }
  0x42   :  { %3792 = vsyncadd [#allocation9], 4294926336  ;;  %v3804_v1 = vmov 0   ;;  %v109_v2 = vld [vmem:[#allocation5 + $0x40] sm:$0xff]  ;;  %v110_v4 = vld [vmem:[#allocation5 + $0x48] sm:$0xff]  ;;  %vm239_vm0 = vcmask 261120  }
  0x43   :  { %275 = vmatprep.mubr.bf16.mxu0 %v3804_v1  ;;  %316 = vmatprep.mubr.bf16.mxu1 %v3804_v1  ;;  %v113_v3 = vld [vmem:[#allocation5 + $0x60] sm:$0xff]  ;;  %v114_v6 = vld [vmem:[#allocation5 + $0x68] sm:$0xff]  ;;  %v111_v16 = vld [vmem:[#allocation5 + $0x50] sm:$0xff]  ;;  %vm2845_vm1 = vcmask 7168  }
  0x44   :  { %v2863_v5 = vcombine.high %v109_v2, %v113_v3  ;;  %v2862_v7 = vcombine.low %v109_v2, %v113_v3  ;;  %v101_v8 = vld [vmem:[#allocation5] sm:$0xff]  ;;  %v2865_v10 = vcombine.high %v110_v4, %v114_v6  ;;  %v2864_v11 = vcombine.low %v110_v4, %v114_v6  ;;  %v102_v13 = vld [vmem:[#allocation5 + $0x8] sm:$0xff]  ;;  %v115_v17 = vld [vmem:[#allocation5 + $0x70] sm:$0xff] }
  0x45   :  { %v105_v9 = vld [vmem:[#allocation5 + $0x20] sm:$0xff]  ;;  %v106_v14 = vld [vmem:[#allocation5 + $0x28] sm:$0xff]  ;;  %v112_v18 = vld [vmem:[#allocation5 + $0x58] sm:$0xff]  ;;  %v2867_v23 = vcombine.high %v111_v16, %v115_v17  ;;  %v2866_v30 = vcombine.low %v111_v16, %v115_v17 }
  0x46   :  { %v2855_v12 = vcombine.high %v101_v8, %v105_v9  ;;  %255 = vmatprep.subr.bf16.mxu0 %v2863_v5  ;;  %v2857_v15 = vcombine.high %v102_v13, %v106_v14  ;;  %296 = vmatprep.subr.bf16.mxu1 %v2865_v10  ;;  %v2854_v19 = vcombine.low %v101_v8, %v105_v9  ;;  %v99_v20 = vld [vmem:[#allocation3] sm:$0xff]  ;;  %v103_v24 = vld [vmem:[#allocation5 + $0x10] sm:$0xff] }
  0x47   :  { %256 = vmatpush1.bf16.msra.mxu0 %v2862_v7  ;;  %v116_v21 = vld [vmem:[#allocation5 + $0x78] sm:$0xff]  ;;  %297 = vmatpush1.bf16.msra.mxu1 %v2864_v11  ;;  %v2856_v22 = vcombine.low %v102_v13, %v106_v14  ;;  %v107_v26 = vld [vmem:[#allocation5 + $0x30] sm:$0xff]  ;;  %v100_v28 = vpack.c.bf16 %v99_v20, %v99_v20 }
  0x48   :  { %257 = vmatprep.subr.bf16.mxu0 %v2855_v12  ;;  %298 = vmatprep.subr.bf16.mxu1 %v2857_v15  ;;  %v2869_v25 = vcombine.high %v112_v18, %v116_v21  ;;  %v104_v27 = vld [vmem:[#allocation5 + $0x18] sm:$0xff]  ;;  %v2868_v31 = vcombine.low %v112_v18, %v116_v21  ;;  %v2859_v32 = vcombine.high %v103_v24, %v107_v26 }
  0x49   :  { %v108_v29 = vld [vmem:[#allocation5 + $0x38] sm:$0xff]  ;;  %v2858_v34 = vcombine.low %v103_v24, %v107_v26 }
  0x4a   :  { %v2861_v33 = vcombine.high %v104_v27, %v108_v29  ;;  %v2860_v35 = vcombine.low %v104_v27, %v108_v29  ;;  %v3209_v36 = vld [vmem:[#allocation8 + $0xe4] ss:$16 sps:$4 sm:$0xff]   ;;  %v3207_v38 = vld [vmem:[#allocation8 + $0xe0] ss:$16 sps:$4 sm:$0xff]  }
  0x4b   :  { %258 = vmatpush1.bf16.msra.mxu0 %v2854_v19  ;;  %299 = vmatpush1.bf16.msra.mxu1 %v2856_v22  ;;  %v3212_v37 = vld [vmem:[#allocation8 + $0x2e4] ss:$16 sps:$4 sm:$0xff]   ;;  %v3210_v39 = vld [vmem:[#allocation8 + $0x2e0] ss:$16 sps:$4 sm:$0xff]  }
  0x4c   :  { %337 = vmatprep.subr.bf16.mxu0 %v2867_v23  ;;  %378 = vmatprep.subr.bf16.mxu1 %v2869_v25  ;;  %v3215_v40 = vld [vmem:[#allocation8 + $0xc4] ss:$16 sps:$4 sm:$0xff]   ;;  %v3213_v42 = vld [vmem:[#allocation8 + $0xc0] ss:$16 sps:$4 sm:$0xff]  }
  0x4d   :  { %v3218_v41 = vld [vmem:[#allocation8 + $0x2c4] ss:$16 sps:$4 sm:$0xff]   ;;  %v3216_v43 = vld [vmem:[#allocation8 + $0x2c0] ss:$16 sps:$4 sm:$0xff]  }
  0x4e   :  { %2870 = vmatmul.mubr.msk.bf16.vlgmr.msra.gmra.mxu0 %vm239_vm0, %v100_v28  ;;  %2871 = vmatmul.mubr.msk.bf16.vlgmr.msra.gmra.mxu1 %vm239_vm0, %v100_v28  ;;  %v3221_v44 = vld [vmem:[#allocation8 + $0xa4] ss:$16 sps:$4 sm:$0xff]   ;;  %v3219_v46 = vld [vmem:[#allocation8 + $0xa0] ss:$16 sps:$4 sm:$0xff]  }
  0x4f   :  { %338 = vmatpush1.bf16.msra.mxu0 %v2866_v30  ;;  %379 = vmatpush1.bf16.msra.mxu1 %v2868_v31  ;;  %v3224_v45 = vld [vmem:[#allocation8 + $0x2a4] ss:$16 sps:$4 sm:$0xff]   ;;  %v3222_v47 = vld [vmem:[#allocation8 + $0x2a0] ss:$16 sps:$4 sm:$0xff]  }
  0x50   :  { %339 = vmatprep.subr.bf16.mxu0 %v2859_v32  ;;  %380 = vmatprep.subr.bf16.mxu1 %v2861_v33  ;;  %v3227_v48 = vld [vmem:[#allocation8 + $0x84] ss:$16 sps:$4 sm:$0xff]   ;;  %v3225_v50 = vld [vmem:[#allocation8 + $0x80] ss:$16 sps:$4 sm:$0xff]  }
  0x51   :  { %357 = vmatprep.mubr.bf16.mxu0 %v3804_v1  ;;  %398 = vmatprep.mubr.bf16.mxu1 %v3804_v1  ;;  %v3230_v49 = vld [vmem:[#allocation8 + $0x284] ss:$16 sps:$4 sm:$0xff]   ;;  %v3228_v51 = vld [vmem:[#allocation8 + $0x280] ss:$16 sps:$4 sm:$0xff]  }
  0x52   :  { %v3233_v52 = vld [vmem:[#allocation8 + $0x64] ss:$16 sps:$4 sm:$0xff]   ;;  %v3231_v54 = vld [vmem:[#allocation8 + $0x60] ss:$16 sps:$4 sm:$0xff]  }
  0x53   :  { %340 = vmatpush1.bf16.msra.mxu0 %v2858_v34  ;;  %381 = vmatpush1.bf16.msra.mxu1 %v2860_v35  ;;  %v3236_v53 = vld [vmem:[#allocation8 + $0x264] ss:$16 sps:$4 sm:$0xff]   ;;  %v3234_v55 = vld [vmem:[#allocation8 + $0x260] ss:$16 sps:$4 sm:$0xff]  }
  0x54   :  { %1989 = vmatprep.subr.bf16.mxu0 %v3209_v36  ;;  %2030 = vmatprep.subr.bf16.mxu1 %v3212_v37  ;;  %v3239_v56 = vld [vmem:[#allocation8 + $0x44] ss:$16 sps:$4 sm:$0xff]   ;;  %v3237_v58 = vld [vmem:[#allocation8 + $0x40] ss:$16 sps:$4 sm:$0xff]  }
  0x55   :  { %v3242_v57 = vld [vmem:[#allocation8 + $0x244] ss:$16 sps:$4 sm:$0xff]   ;;  %v3240_v59 = vld [vmem:[#allocation8 + $0x240] ss:$16 sps:$4 sm:$0xff]  }
  0x56   :  { %2872 = vmatmul.mubr.msk.bf16.vlgmr.msra.gmra.mxu0 %vm239_vm0, %v100_v28  ;;  %2873 = vmatmul.mubr.msk.bf16.vlgmr.msra.gmra.mxu1 %vm239_vm0, %v100_v28  ;;  %v3245_v60 = vld [vmem:[#allocation8 + $0x24] ss:$16 sps:$4 sm:$0xff]   ;;  %v3243_v62 = vld [vmem:[#allocation8 + $0x20] ss:$16 sps:$4 sm:$0xff]  }
  0x57   :  { %1990 = vmatpush1.bf16.msra.mxu0 %v3207_v38  ;;  %2031 = vmatpush1.bf16.msra.mxu1 %v3210_v39  ;;  %v3248_v61 = vld [vmem:[#allocation8 + $0x224] ss:$16 sps:$4 sm:$0xff]   ;;  %v3246_v63 = vld [vmem:[#allocation8 + $0x220] ss:$16 sps:$4 sm:$0xff]   ;;  %v119_v38 = vlaneseq }
  0x58   :  { %1991 = vmatprep.subr.bf16.mxu0 %v3215_v40  ;;  %2032 = vmatprep.subr.bf16.mxu1 %v3218_v41  ;;  %v3251_v0 = vld [vmem:[#allocation8 + $0x4] ss:$16 sps:$4 sm:$0xff]   ;;  %v3249_v1 = vld [vmem:[#allocation8] ss:$16 sps:$4 sm:$0xff]   ;;  %v3882_v41 = vld [vmem:[#allocation7] sm:$0xff] }
  0x59   :  { %v3254_v2 = vld [vmem:[#allocation8 + $0x204] ss:$16 sps:$4 sm:$0xff]   ;;  %v3252_v3 = vld [vmem:[#allocation8 + $0x200] ss:$16 sps:$4 sm:$0xff]   ;;  %v3877_v39 = vshrl.u32 %v119_v38, 7 }
  0x5a   :  { %v3257_v4 = vld [vmem:[#allocation8 + $0x1e4] ss:$16 sps:$4 sm:$0xff]   ;;  %v3255_v6 = vld [vmem:[#allocation8 + $0x1e0] ss:$16 sps:$4 sm:$0xff]  }
  0x5b   :  { %1992 = vmatpush1.bf16.msra.mxu0 %v3213_v42  ;;  %2033 = vmatpush1.bf16.msra.mxu1 %v3216_v43  ;;  %v3260_v5 = vld [vmem:[#allocation8 + $0x3e4] ss:$16 sps:$4 sm:$0xff]   ;;  %v3258_v7 = vld [vmem:[#allocation8 + $0x3e0] ss:$16 sps:$4 sm:$0xff]   ;;  %v3880_v40 = vsub.s32 0, %v3877_v39  ;;  %v3885_v42 = vsub.s32 2, %v3877_v39 }
  0x5c   :  { %1993 = vmatprep.subr.bf16.mxu0 %v3221_v44  ;;  %2034 = vmatprep.subr.bf16.mxu1 %v3224_v45  ;;  %v3263_v8 = vld [vmem:[#allocation8 + $0x1c4] ss:$16 sps:$4 sm:$0xff]   ;;  %v3261_v10 = vld [vmem:[#allocation8 + $0x1c0] ss:$16 sps:$4 sm:$0xff]   ;;  %v3888_v43 = vsub.s32 1, %v3877_v39  ;;  %v133_v44 = vsub.s32 3, %v3877_v39 }
  0x5d   :  { %v3266_v9 = vld [vmem:[#allocation8 + $0x3c4] ss:$16 sps:$4 sm:$0xff]   ;;  %v3264_v11 = vld [vmem:[#allocation8 + $0x3c0] ss:$16 sps:$4 sm:$0xff]   ;;  %v122_v45 = vrot.slane %v3882_v41, %v3880_v40 }
  0x5e   :  { %v3269_v12 = vld [vmem:[#allocation8 + $0x1a4] ss:$16 sps:$4 sm:$0xff]   ;;  %v3267_v14 = vld [vmem:[#allocation8 + $0x1a0] ss:$16 sps:$4 sm:$0xff]  }
  0x5f   :  { %1994 = vmatpush1.bf16.msra.mxu0 %v3219_v46  ;;  %2035 = vmatpush1.bf16.msra.mxu1 %v3222_v47  ;;  %v3272_v13 = vld [vmem:[#allocation8 + $0x3a4] ss:$16 sps:$4 sm:$0xff]   ;;  %v3270_v15 = vld [vmem:[#allocation8 + $0x3a0] ss:$16 sps:$4 sm:$0xff]   ;;  %v130_v46 = vrot.slane %v3882_v41, %v3885_v42  ;;  %v126_v47 = vrot.slane %v3882_v41, %v3888_v43 }
  0x60   :  { %1995 = vmatprep.subr.bf16.mxu0 %v3227_v48  ;;  %2036 = vmatprep.subr.bf16.mxu1 %v3230_v49  ;;  %v3275_v16 = vld [vmem:[#allocation8 + $0x184] ss:$16 sps:$4 sm:$0xff]   ;;  %v3273_v18 = vld [vmem:[#allocation8 + $0x180] ss:$16 sps:$4 sm:$0xff]   ;;  %v134_v49 = vrot.slane %v3882_v41, %v133_v44 }
  0x61   :  { %v3278_v17 = vld [vmem:[#allocation8 + $0x384] ss:$16 sps:$4 sm:$0xff]   ;;  %v3276_v19 = vld [vmem:[#allocation8 + $0x380] ss:$16 sps:$4 sm:$0xff]  }
  0x62   :  { %v3281_v20 = vld [vmem:[#allocation8 + $0x164] ss:$16 sps:$4 sm:$0xff]   ;;  %v3279_v22 = vld [vmem:[#allocation8 + $0x160] ss:$16 sps:$4 sm:$0xff]  }
  0x63   :  { %1996 = vmatpush1.bf16.msra.mxu0 %v3225_v50  ;;  %2037 = vmatpush1.bf16.msra.mxu1 %v3228_v51  ;;  %v3284_v21 = vld [vmem:[#allocation8 + $0x364] ss:$16 sps:$4 sm:$0xff]   ;;  %v3282_v23 = vld [vmem:[#allocation8 + $0x360] ss:$16 sps:$4 sm:$0xff]  }
  0x64   :  { %1997 = vmatprep.subr.bf16.mxu0 %v3233_v52  ;;  %2038 = vmatprep.subr.bf16.mxu1 %v3236_v53  ;;  %v3287_v24 = vld [vmem:[#allocation8 + $0x144] ss:$16 sps:$4 sm:$0xff]   ;;  %v3285_v26 = vld [vmem:[#allocation8 + $0x140] ss:$16 sps:$4 sm:$0xff]  }
  0x65   :  { %v3290_v25 = vld [vmem:[#allocation8 + $0x344] ss:$16 sps:$4 sm:$0xff]   ;;  %v3288_v27 = vld [vmem:[#allocation8 + $0x340] ss:$16 sps:$4 sm:$0xff]  }
  0x66   :  { %v3293_v28 = vld [vmem:[#allocation8 + $0x124] ss:$16 sps:$4 sm:$0xff]   ;;  %v3291_v30 = vld [vmem:[#allocation8 + $0x120] ss:$16 sps:$4 sm:$0xff]  }
  0x67   :  { %1998 = vmatpush1.bf16.msra.mxu0 %v3231_v54  ;;  %2039 = vmatpush1.bf16.msra.mxu1 %v3234_v55  ;;  %v3296_v29 = vld [vmem:[#allocation8 + $0x324] ss:$16 sps:$4 sm:$0xff]   ;;  %v3294_v31 = vld [vmem:[#allocation8 + $0x320] ss:$16 sps:$4 sm:$0xff]  }
  0x68   :  { %1999 = vmatprep.subr.bf16.mxu0 %v3239_v56  ;;  %2040 = vmatprep.subr.bf16.mxu1 %v3242_v57  ;;  %v3299_v32 = vld [vmem:[#allocation8 + $0x104] ss:$16 sps:$4 sm:$0xff]   ;;  %v3297_v34 = vld [vmem:[#allocation8 + $0x100] ss:$16 sps:$4 sm:$0xff]   ;;  %v141_v57 = vsub.s32 5, %v3877_v39 }
  0x69   :  { %v3302_v33 = vld [vmem:[#allocation8 + $0x304] ss:$16 sps:$4 sm:$0xff]   ;;  %v3300_v35 = vld [vmem:[#allocation8 + $0x300] ss:$16 sps:$4 sm:$0xff]  }
  0x6a   :  { %v3305_v36 = vld [vmem:[#allocation8 + $0x4e4] ss:$16 sps:$4 sm:$0xff]  }
  0x6b   :  { %2000 = vmatpush1.bf16.msra.mxu0 %v3237_v58  ;;  %2041 = vmatpush1.bf16.msra.mxu1 %v3240_v59  ;;  %v3308_v37 = vld [vmem:[#allocation8 + $0x6e4] ss:$16 sps:$4 sm:$0xff]  }
  0x6c   :  { %2001 = vmatprep.subr.bf16.mxu0 %v3245_v60  ;;  %2042 = vmatprep.subr.bf16.mxu1 %v3248_v61  ;;  %v149_v61 = vsub.s32 7, %v3877_v39  ;;  %v3323_v38 = vld [vmem:[#allocation8 + $0x484] ss:$16 sps:$4 sm:$0xff]  }
  0x6f   :  { %2002 = vmatpush1.bf16.msra.mxu0 %v3243_v62  ;;  %2043 = vmatpush1.bf16.msra.mxu1 %v3246_v63 }
  0x70   :  { %2003 = vmatprep.subr.bf16.mxu0 %v3251_v0  ;;  %2044 = vmatprep.subr.bf16.mxu1 %v3254_v2 }
  0x73   :  { %2004 = vmatpush1.bf16.msra.mxu0 %v3249_v1  ;;  %2045 = vmatpush1.bf16.msra.mxu1 %v3252_v3 }
  0x74   :  { %2005 = vmatprep.subr.bf16.mxu0 %v3257_v4  ;;  %2046 = vmatprep.subr.bf16.mxu1 %v3260_v5 }
  0x77   :  { %2006 = vmatpush2.bf16.msra.mxu0 %v3255_v6  ;;  %2047 = vmatpush2.bf16.msra.mxu1 %v3258_v7  ;;  %v142_v6 = vrot.slane %v3882_v41, %v141_v57  ;;  %v3341_v57 = vld [vmem:[#allocation8 + $0x424] ss:$16 sps:$4 sm:$0xff]  }
  0x78   :  { %2007 = vmatprep.subr.bf16.mxu0 %v3263_v8  ;;  %2048 = vmatprep.subr.bf16.mxu1 %v3266_v9  ;;  %v150_v9 = vrot.slane %v3882_v41, %v149_v61  ;;  %v3347_v61 = vld [vmem:[#allocation8 + $0x404] ss:$16 sps:$4 sm:$0xff]  }
  0x7b   :  { %2008 = vmatpush2.bf16.msra.mxu0 %v3261_v10  ;;  %2049 = vmatpush2.bf16.msra.mxu1 %v3264_v11  ;;  %v3303_v11 = vld [vmem:[#allocation8 + $0x4e0] ss:$16 sps:$4 sm:$0xff]  }
  0x7c   :  { %2009 = vmatprep.subr.bf16.mxu0 %v3269_v12  ;;  %2050 = vmatprep.subr.bf16.mxu1 %v3272_v13 }
  0x7f   :  { %2010 = vmatpush2.bf16.msra.mxu0 %v3267_v14  ;;  %2051 = vmatpush2.bf16.msra.mxu1 %v3270_v15  ;;  %v3306_v15 = vld [vmem:[#allocation8 + $0x6e0] ss:$16 sps:$4 sm:$0xff]  }
  0x80   :  { %2011 = vmatprep.subr.bf16.mxu0 %v3275_v16  ;;  %2052 = vmatprep.subr.bf16.mxu1 %v3278_v17  ;;  %v3311_v16 = vld [vmem:[#allocation8 + $0x4c4] ss:$16 sps:$4 sm:$0xff]  }
  0x83   :  { %2012 = vmatpush2.bf16.msra.mxu0 %v3273_v18  ;;  %2053 = vmatpush2.bf16.msra.mxu1 %v3276_v19  ;;  %v3314_v19 = vld [vmem:[#allocation8 + $0x6c4] ss:$16 sps:$4 sm:$0xff]  }
  0x84   :  { %2013 = vmatprep.subr.bf16.mxu0 %v3281_v20  ;;  %2054 = vmatprep.subr.bf16.mxu1 %v3284_v21 }
  0x87   :  { %2014 = vmatpush2.bf16.msra.mxu0 %v3279_v22  ;;  %2055 = vmatpush2.bf16.msra.mxu1 %v3282_v23 }
  0x88   :  { %2015 = vmatprep.subr.bf16.mxu0 %v3287_v24  ;;  %2056 = vmatprep.subr.bf16.mxu1 %v3290_v25  ;;  %v3309_v24 = vld [vmem:[#allocation8 + $0x4c0] ss:$16 sps:$4 sm:$0xff]  }
  0x8b   :  { %2016 = vmatpush2.bf16.msra.mxu0 %v3285_v26  ;;  %2057 = vmatpush2.bf16.msra.mxu1 %v3288_v27  ;;  %v3312_v27 = vld [vmem:[#allocation8 + $0x6c0] ss:$16 sps:$4 sm:$0xff]  }
  0x8c   :  { %2017 = vmatprep.subr.bf16.mxu0 %v3293_v28  ;;  %2058 = vmatprep.subr.bf16.mxu1 %v3296_v29  ;;  %v3317_v28 = vld [vmem:[#allocation8 + $0x4a4] ss:$16 sps:$4 sm:$0xff]  }
  0x8f   :  { %2018 = vmatpush2.bf16.msra.mxu0 %v3291_v30  ;;  %2059 = vmatpush2.bf16.msra.mxu1 %v3294_v31  ;;  %v3320_v31 = vld [vmem:[#allocation8 + $0x6a4] ss:$16 sps:$4 sm:$0xff]  }
  0x90   :  { %2019 = vmatprep.subr.bf16.mxu0 %v3299_v32  ;;  %2060 = vmatprep.subr.bf16.mxu1 %v3302_v33 }
  0x93   :  { %2020 = vmatpush2.bf16.msra.mxu0 %v3297_v34  ;;  %2061 = vmatpush2.bf16.msra.mxu1 %v3300_v35  ;;  %v3315_v35 = vld [vmem:[#allocation8 + $0x4a0] ss:$16 sps:$4 sm:$0xff]  }
  0x94   :  { %2071 = vmatprep.subr.bf16.mxu0 %v3305_v36  ;;  %2112 = vmatprep.subr.bf16.mxu1 %v3308_v37  ;;  %v3318_v37 = vld [vmem:[#allocation8 + $0x6a0] ss:$16 sps:$4 sm:$0xff]  }
 0x10e   :  { %v277_v48 = vpop.f32.mrf.mxu0  ;;  %v318_v51 = vpop.f32.mrf.mxu1 }
 0x10f   :  { %v278_v50 = vadd.f32 %v277_v48, %v122_v45  ;;  %v319_v52 = vadd.f32 %v318_v51, %v130_v46  ;;  %v3326_v46 = vld [vmem:[#allocation8 + $0x684] ss:$16 sps:$4 sm:$0xff]   ;;  %v3324_v48 = vld [vmem:[#allocation8 + $0x680] ss:$16 sps:$4 sm:$0xff]  }
 0x110   :  { %v279_v53 = vpop.f32.mrf.mxu0  ;;  %v320_v56 = vpop.f32.mrf.mxu1  ;;  %v3327_v51 = vld [vmem:[#allocation8 + $0x460] ss:$16 sps:$4 sm:$0xff]  }
 0x111   :  { %v407_v54 = vmul.f32 0.2, %v278_v50  ;;  %v280_v55 = vadd.f32 %v279_v53, %v126_v47  ;;  %v409_v58 = vmul.f32 0.2, %v319_v52  ;;  %v321_v59 = vadd.f32 %v320_v56, %v134_v49  ;;  %v3321_v47 = vld [vmem:[#allocation8 + $0x480] ss:$16 sps:$4 sm:$0xff]  }
 0x112   :  { %v281_v60 = vpop.f32.mrf.mxu0  ;;  %v322_v63 = vpop.f32.mrf.mxu1  ;;  %v3329_v49 = vld [vmem:[#allocation8 + $0x464] ss:$16 sps:$4 sm:$0xff]   ;;  %v3336_v56 = vld [vmem:[#allocation8 + $0x640] ss:$16 sps:$4 sm:$0xff]  }
 0x113   :  { %v408_v62 = vmul.f32 0.2, %v280_v55  ;;  %v415_v0 = vmax.f32 %v278_v50, %v407_v54  ;;  %v410_v1 = vmul.f32 0.2, %v321_v59  ;;  %v417_v3 = vmax.f32 %v319_v52, %v409_v58  ;;  %v3332_v50 = vld [vmem:[#allocation8 + $0x664] ss:$16 sps:$4 sm:$0xff]  }
 0x114   :  { %v282_v2 = vpop.f32.mrf.mxu0  ;;  %v323_v5 = vpop.f32.mrf.mxu1  ;;  %v3330_v52 = vld [vmem:[#allocation8 + $0x660] ss:$16 sps:$4 sm:$0xff]   ;;  %v3335_v53 = vld [vmem:[#allocation8 + $0x444] ss:$16 sps:$4 sm:$0xff]  }
 0x115   :  { %v416_v4 = vmax.f32 %v280_v55, %v408_v62  ;;  %v418_v7 = vmax.f32 %v321_v59, %v410_v1  ;;  %v3910_v13 = vpack.c.bf16 %v415_v0, %v415_v0  ;;  %v3914_v18 = vpack.c.bf16 %v417_v3, %v417_v3  ;;  %v3338_v54 = vld [vmem:[#allocation8 + $0x644] ss:$16 sps:$4 sm:$0xff]   ;;  %v3333_v55 = vld [vmem:[#allocation8 + $0x440] ss:$16 sps:$4 sm:$0xff]  }
 0x116   :  { %v3903_v8 = vpop.f32.mrf.mxu0  ;;  %v3908_v12 = vpop.f32.mrf.mxu1  ;;  %v3344_v58 = vld [vmem:[#allocation8 + $0x624] ss:$16 sps:$4 sm:$0xff]   ;;  %v3339_v59 = vld [vmem:[#allocation8 + $0x420] ss:$16 sps:$4 sm:$0xff]  }
 0x117   :  { %v3906_v10 = vpack.c.bf16 %v416_v4, %v416_v4  ;;  %v3912_v14 = vpack.c.bf16 %v418_v7, %v418_v7  ;;  %v3342_v60 = vld [vmem:[#allocation8 + $0x620] ss:$16 sps:$4 sm:$0xff]   ;;  %v3350_v62 = vld [vmem:[#allocation8 + $0x604] ss:$16 sps:$4 sm:$0xff]  }
 0x118   :  { %v361_v17 = vpop.f32.mrf.mxu0  ;;  %v402_v21 = vpop.f32.mrf.mxu1  ;;  %v3345_v63 = vld [vmem:[#allocation8 + $0x400] ss:$16 sps:$4 sm:$0xff]   ;;  %v3353_v1 = vld [vmem:[#allocation8 + $0x5e4] ss:$16 sps:$4 sm:$0xff]  }
 0x119   :  { %2021 = vmatprep.mubr.bf16.mxu0 %v3906_v10  ;;  %v362_v20 = vadd.f32 %v361_v17, %v142_v6  ;;  %2062 = vmatprep.mubr.bf16.mxu1 %v3912_v14  ;;  %v403_v23 = vadd.f32 %v402_v21, %v150_v9  ;;  %v3348_v0 = vld [vmem:[#allocation8 + $0x600] ss:$16 sps:$4 sm:$0xff]   ;;  %v3356_v2 = vld [vmem:[#allocation8 + $0x7e4] ss:$16 sps:$4 sm:$0xff]  }
 0x11a   :  { %2022 = vmatmul.mubr.bf16.vlgmr.msra.gmra.mxu0 %v3910_v13  ;;  %v363_v22 = vpop.f32.mrf.mxu0  ;;  %2063 = vmatmul.mubr.bf16.vlgmr.msra.gmra.mxu1 %v3914_v18  ;;  %v404_v26 = vpop.f32.mrf.mxu1  ;;  %v3351_v3 = vld [vmem:[#allocation8 + $0x5e0] ss:$16 sps:$4 sm:$0xff]   ;;  %v3359_v5 = vld [vmem:[#allocation8 + $0x5c4] ss:$16 sps:$4 sm:$0xff]  }
 0x11b   :  { %2072 = vmatpush1.bf16.msra.mxu0 %v3303_v11  ;;  %v412_v25 = vmul.f32 0.2, %v362_v20  ;;  %2113 = vmatpush1.bf16.msra.mxu1 %v3306_v15  ;;  %v414_v29 = vmul.f32 0.2, %v403_v23  ;;  %v3354_v4 = vld [vmem:[#allocation8 + $0x7e0] ss:$16 sps:$4 sm:$0xff]  }
 0x11c   :  { %2073 = vmatprep.subr.bf16.mxu0 %v3311_v16  ;;  %v364_v30 = vpop.f32.mrf.mxu0  ;;  %2114 = vmatprep.subr.bf16.mxu1 %v3314_v19  ;;  %v405_v33 = vpop.f32.mrf.mxu1  ;;  %v3362_v6 = vld [vmem:[#allocation8 + $0x7c4] ss:$16 sps:$4 sm:$0xff]   ;;  %v3357_v7 = vld [vmem:[#allocation8 + $0x5c0] ss:$16 sps:$4 sm:$0xff]   ;;  %v145_v26 = vsub.s32 6, %v3877_v39 }
 0x11d   :  { %v420_v32 = vmax.f32 %v362_v20, %v412_v25  ;;  %v422_v34 = vmax.f32 %v403_v23, %v414_v29  ;;  %v3360_v9 = vld [vmem:[#allocation8 + $0x7c0] ss:$16 sps:$4 sm:$0xff]   ;;  %v3365_v11 = vld [vmem:[#allocation8 + $0x5a4] ss:$16 sps:$4 sm:$0xff]   ;;  %v137_v23 = vsub.s32 4, %v3877_v39 }
 0x11e   :  { %v3368_v15 = vld [vmem:[#allocation8 + $0x7a4] ss:$16 sps:$4 sm:$0xff]   ;;  %v3363_v16 = vld [vmem:[#allocation8 + $0x5a0] ss:$16 sps:$4 sm:$0xff]  }
 0x11f   :  { %2074 = vmatpush1.bf16.msra.mxu0 %v3309_v24  ;;  %v3920_v36 = vpack.c.bf16 %v420_v32, %v420_v32  ;;  %2115 = vmatpush1.bf16.msra.mxu1 %v3312_v27  ;;  %v3922_v45 = vpack.c.bf16 %v422_v34, %v422_v34  ;;  %v3366_v17 = vld [vmem:[#allocation8 + $0x7a0] ss:$16 sps:$4 sm:$0xff]   ;;  %v3371_v19 = vld [vmem:[#allocation8 + $0x584] ss:$16 sps:$4 sm:$0xff]  }
 0x120   :  { %2075 = vmatprep.subr.bf16.mxu0 %v3317_v28  ;;  %2116 = vmatprep.subr.bf16.mxu1 %v3320_v31  ;;  %v3374_v20 = vld [vmem:[#allocation8 + $0x784] ss:$16 sps:$4 sm:$0xff]   ;;  %v3369_v21 = vld [vmem:[#allocation8 + $0x580] ss:$16 sps:$4 sm:$0xff]   ;;  %v138_v28 = vrot.slane %v3882_v41, %v137_v23  ;;  %v146_v31 = vrot.slane %v3882_v41, %v145_v26  ;;  %v3438_v23 = vld [vmem:[#allocation8 + $0x228] ss:$16 sps:$4 sm:$0xff]  }
 0x121   :  { %2103 = vmatprep.mubr.bf16.mxu0 %v3920_v36  ;;  %2144 = vmatprep.mubr.bf16.mxu1 %v3922_v45  ;;  %v3372_v22 = vld [vmem:[#allocation8 + $0x780] ss:$16 sps:$4 sm:$0xff]   ;;  %v3377_v24 = vld [vmem:[#allocation8 + $0x564] ss:$16 sps:$4 sm:$0xff]   ;;  %v3441_v26 = vld [vmem:[#allocation8 + $0x8] ss:$16 sps:$4 sm:$0xff]  }
 0x122   :  { %v3380_v25 = vld [vmem:[#allocation8 + $0x764] ss:$16 sps:$4 sm:$0xff]   ;;  %v3375_v27 = vld [vmem:[#allocation8 + $0x560] ss:$16 sps:$4 sm:$0xff]   ;;  %v360_v34 = vadd.f32 %v3903_v8, %v138_v28  ;;  %v3449_v28 = vld [vmem:[#allocation8 + $0x1ec] ss:$16 sps:$4 sm:$0xff]  }
 0x123   :  { %2076 = vmatpush1.bf16.msra.mxu0 %v3315_v35  ;;  %2117 = vmatpush1.bf16.msra.mxu1 %v3318_v37  ;;  %v3378_v29 = vld [vmem:[#allocation8 + $0x760] ss:$16 sps:$4 sm:$0xff]   ;;  %v3383_v30 = vld [vmem:[#allocation8 + $0x544] ss:$16 sps:$4 sm:$0xff]  }
 0x124   :  { %2077 = vmatprep.subr.bf16.mxu0 %v3323_v38  ;;  %2118 = vmatprep.subr.bf16.mxu1 %v3326_v46  ;;  %v3386_v32 = vld [vmem:[#allocation8 + $0x744] ss:$16 sps:$4 sm:$0xff]   ;;  %v3381_v33 = vld [vmem:[#allocation8 + $0x540] ss:$16 sps:$4 sm:$0xff]   ;;  %v401_v38 = vadd.f32 %v3908_v12, %v146_v31  ;;  %v3450_v31 = vld [vmem:[#allocation8 + $0x3e8] ss:$16 sps:$4 sm:$0xff]  }
 0x125   :  { %v3384_v35 = vld [vmem:[#allocation8 + $0x740] ss:$16 sps:$4 sm:$0xff]   ;;  %v3389_v37 = vld [vmem:[#allocation8 + $0x524] ss:$16 sps:$4 sm:$0xff]  }
 0x126   :  { %v3392_v46 = vld [vmem:[#allocation8 + $0x724] ss:$16 sps:$4 sm:$0xff]   ;;  %v3393_v8 = vld [vmem:[#allocation8 + $0x500] ss:$16 sps:$4 sm:$0xff]  }
 0x127   :  { %2078 = vmatpush1.bf16.msra.mxu0 %v3321_v47  ;;  %2119 = vmatpush1.bf16.msra.mxu1 %v3324_v48  ;;  %v3387_v47 = vld [vmem:[#allocation8 + $0x520] ss:$16 sps:$4 sm:$0xff]   ;;  %v411_v48 = vmul.f32 0.2, %v360_v34  ;;  %v3395_v41 = vld [vmem:[#allocation8 + $0x504] ss:$16 sps:$4 sm:$0xff]  }
 0x128   :  { %2079 = vmatprep.subr.bf16.mxu0 %v3329_v49  ;;  %2120 = vmatprep.subr.bf16.mxu1 %v3332_v50  ;;  %v3390_v49 = vld [vmem:[#allocation8 + $0x720] ss:$16 sps:$4 sm:$0xff]   ;;  %v413_v50 = vmul.f32 0.2, %v401_v38 }
 0x12a   :  { %v421_v12 = vmax.f32 %v401_v38, %v413_v50  ;;  %v3464_v38 = vld [vmem:[#allocation8 + $0x3ac] ss:$16 sps:$4 sm:$0xff]   ;;  %v3468_v50 = vld [vmem:[#allocation8 + $0x388] ss:$16 sps:$4 sm:$0xff]  }
 0x12b   :  { %2080 = vmatpush1.bf16.msra.mxu0 %v3327_v51  ;;  %2121 = vmatpush1.bf16.msra.mxu1 %v3330_v52  ;;  %v3398_v51 = vld [vmem:[#allocation8 + $0x704] ss:$16 sps:$4 sm:$0xff]   ;;  %v419_v52 = vmax.f32 %v360_v34, %v411_v48  ;;  %v3453_v34 = vld [vmem:[#allocation8 + $0x1c8] ss:$16 sps:$4 sm:$0xff]   ;;  %v3467_v48 = vld [vmem:[#allocation8 + $0x18c] ss:$16 sps:$4 sm:$0xff]  }
 0x12c   :  { %2081 = vmatprep.subr.bf16.mxu0 %v3335_v53  ;;  %2122 = vmatprep.subr.bf16.mxu1 %v3338_v54  ;;  %v3396_v53 = vld [vmem:[#allocation8 + $0x700] ss:$16 sps:$4 sm:$0xff]   ;;  %v3401_v54 = vld [vmem:[#allocation8 + $0xec] ss:$16 sps:$4 sm:$0xff]  }
 0x12f   :  { %2082 = vmatpush1.bf16.msra.mxu0 %v3333_v55  ;;  %2123 = vmatpush1.bf16.msra.mxu1 %v3336_v56  ;;  %v3404_v55 = vld [vmem:[#allocation8 + $0x2ec] ss:$16 sps:$4 sm:$0xff]   ;;  %v3399_v56 = vld [vmem:[#allocation8 + $0xe8] ss:$16 sps:$4 sm:$0xff]  }
 0x130   :  { %2083 = vmatprep.subr.bf16.mxu0 %v3341_v57  ;;  %2124 = vmatprep.subr.bf16.mxu1 %v3344_v58  ;;  %v3932_v57 = vpack.c.bf16 %v419_v52, %v419_v52  ;;  %v3402_v58 = vld [vmem:[#allocation8 + $0x2e8] ss:$16 sps:$4 sm:$0xff]  }
 0x131   :  { %v3471_v52 = vld [vmem:[#allocation8 + $0x168] ss:$16 sps:$4 sm:$0xff]  }
 0x133   :  { %2084 = vmatpush1.bf16.msra.mxu0 %v3339_v59  ;;  %2125 = vmatpush1.bf16.msra.mxu1 %v3342_v60  ;;  %v3934_v59 = vpack.c.bf16 %v421_v12, %v421_v12  ;;  %v3407_v60 = vld [vmem:[#allocation8 + $0xcc] ss:$16 sps:$4 sm:$0xff]  }
 0x134   :  { %2085 = vmatprep.subr.bf16.mxu0 %v3347_v61  ;;  %2126 = vmatprep.subr.bf16.mxu1 %v3350_v62  ;;  %v3410_v61 = vld [vmem:[#allocation8 + $0x2cc] ss:$16 sps:$4 sm:$0xff]   ;;  %v3405_v62 = vld [vmem:[#allocation8 + $0xc8] ss:$16 sps:$4 sm:$0xff]  }
 0x135   :  { %v3482_v12 = vld [vmem:[#allocation8 + $0x34c] ss:$16 sps:$4 sm:$0xff]  }
 0x137   :  { %2086 = vmatpush1.bf16.msra.mxu0 %v3345_v63  ;;  %2127 = vmatpush1.bf16.msra.mxu1 %v3348_v0  ;;  %v3408_v63 = vld [vmem:[#allocation8 + $0x2c8] ss:$16 sps:$4 sm:$0xff]   ;;  %v3413_v0 = vld [vmem:[#allocation8 + $0xac] ss:$16 sps:$4 sm:$0xff]  }
 0x138   :  { %2087 = vmatprep.subr.bf16.mxu0 %v3353_v1  ;;  %2128 = vmatprep.subr.bf16.mxu1 %v3356_v2  ;;  %v3416_v1 = vld [vmem:[#allocation8 + $0x2ac] ss:$16 sps:$4 sm:$0xff]   ;;  %v3411_v2 = vld [vmem:[#allocation8 + $0xa8] ss:$16 sps:$4 sm:$0xff]  }
 0x13b   :  { %2088 = vmatpush2.bf16.msra.mxu0 %v3351_v3  ;;  %2129 = vmatpush2.bf16.msra.mxu1 %v3354_v4  ;;  %v3414_v3 = vld [vmem:[#allocation8 + $0x2a8] ss:$16 sps:$4 sm:$0xff]   ;;  %v3419_v4 = vld [vmem:[#allocation8 + $0x8c] ss:$16 sps:$4 sm:$0xff]  }
 0x13c   :  { %2089 = vmatprep.subr.bf16.mxu0 %v3359_v5  ;;  %2130 = vmatprep.subr.bf16.mxu1 %v3362_v6  ;;  %v3422_v5 = vld [vmem:[#allocation8 + $0x28c] ss:$16 sps:$4 sm:$0xff]   ;;  %v3417_v6 = vld [vmem:[#allocation8 + $0x88] ss:$16 sps:$4 sm:$0xff]  }
 0x13f   :  { %2090 = vmatpush2.bf16.msra.mxu0 %v3357_v7  ;;  %2131 = vmatpush2.bf16.msra.mxu1 %v3360_v9  ;;  %v3425_v7 = vld [vmem:[#allocation8 + $0x6c] ss:$16 sps:$4 sm:$0xff]  }
 0x140   :  { %2091 = vmatprep.subr.bf16.mxu0 %v3365_v11  ;;  %2132 = vmatprep.subr.bf16.mxu1 %v3368_v15  ;;  %v3428_v9 = vld [vmem:[#allocation8 + $0x26c] ss:$16 sps:$4 sm:$0xff]   ;;  %v3426_v11 = vld [vmem:[#allocation8 + $0x268] ss:$16 sps:$4 sm:$0xff]  }
 0x141   :  { %v3431_v15 = vld [vmem:[#allocation8 + $0x4c] ss:$16 sps:$4 sm:$0xff]  }
 0x143   :  { %2092 = vmatpush2.bf16.msra.mxu0 %v3363_v16  ;;  %2133 = vmatpush2.bf16.msra.mxu1 %v3366_v17  ;;  %v3434_v16 = vld [vmem:[#allocation8 + $0x24c] ss:$16 sps:$4 sm:$0xff]   ;;  %v3429_v17 = vld [vmem:[#allocation8 + $0x48] ss:$16 sps:$4 sm:$0xff]  }
 0x144   :  { %2093 = vmatprep.subr.bf16.mxu0 %v3371_v19  ;;  %2134 = vmatprep.subr.bf16.mxu1 %v3374_v20  ;;  %v3432_v19 = vld [vmem:[#allocation8 + $0x248] ss:$16 sps:$4 sm:$0xff]   ;;  %v3437_v20 = vld [vmem:[#allocation8 + $0x2c] ss:$16 sps:$4 sm:$0xff]  }
 0x147   :  { %2094 = vmatpush2.bf16.msra.mxu0 %v3369_v21  ;;  %2135 = vmatpush2.bf16.msra.mxu1 %v3372_v22  ;;  %v3440_v21 = vld [vmem:[#allocation8 + $0x22c] ss:$16 sps:$4 sm:$0xff]   ;;  %v3435_v22 = vld [vmem:[#allocation8 + $0x28] ss:$16 sps:$4 sm:$0xff]  }
 0x148   :  { %2095 = vmatprep.subr.bf16.mxu0 %v3377_v24  ;;  %2136 = vmatprep.subr.bf16.mxu1 %v3380_v25  ;;  %v3443_v24 = vld [vmem:[#allocation8 + $0xc] ss:$16 sps:$4 sm:$0xff]  }
 0x149   :  { %v3446_v25 = vld [vmem:[#allocation8 + $0x20c] ss:$16 sps:$4 sm:$0xff]  }
 0x14b   :  { %2096 = vmatpush2.bf16.msra.mxu0 %v3375_v27  ;;  %2137 = vmatpush2.bf16.msra.mxu1 %v3378_v29  ;;  %v3444_v27 = vld [vmem:[#allocation8 + $0x208] ss:$16 sps:$4 sm:$0xff]   ;;  %v3452_v29 = vld [vmem:[#allocation8 + $0x3ec] ss:$16 sps:$4 sm:$0xff]  }
 0x14c   :  { %2097 = vmatprep.subr.bf16.mxu0 %v3383_v30  ;;  %2138 = vmatprep.subr.bf16.mxu1 %v3386_v32  ;;  %v3447_v30 = vld [vmem:[#allocation8 + $0x1e8] ss:$16 sps:$4 sm:$0xff]   ;;  %v3455_v32 = vld [vmem:[#allocation8 + $0x1cc] ss:$16 sps:$4 sm:$0xff]  }
 0x14f   :  { %2098 = vmatpush2.bf16.msra.mxu0 %v3381_v33  ;;  %2139 = vmatpush2.bf16.msra.mxu1 %v3384_v35  ;;  %v3458_v33 = vld [vmem:[#allocation8 + $0x3cc] ss:$16 sps:$4 sm:$0xff]   ;;  %v3456_v35 = vld [vmem:[#allocation8 + $0x3c8] ss:$16 sps:$4 sm:$0xff]  }
 0x150   :  { %2099 = vmatprep.subr.bf16.mxu0 %v3389_v37  ;;  %2140 = vmatprep.subr.bf16.mxu1 %v3392_v46  ;;  %v3461_v37 = vld [vmem:[#allocation8 + $0x1ac] ss:$16 sps:$4 sm:$0xff]   ;;  %v3459_v46 = vld [vmem:[#allocation8 + $0x1a8] ss:$16 sps:$4 sm:$0xff]  }
 0x153   :  { %2100 = vmatpush2.bf16.msra.mxu0 %v3387_v47  ;;  %2141 = vmatpush2.bf16.msra.mxu1 %v3390_v49  ;;  %v3462_v47 = vld [vmem:[#allocation8 + $0x3a8] ss:$16 sps:$4 sm:$0xff]   ;;  %v3470_v49 = vld [vmem:[#allocation8 + $0x38c] ss:$16 sps:$4 sm:$0xff]  }
 0x154   :  { %2101 = vmatprep.subr.bf16.mxu0 %v3395_v41  ;;  %2142 = vmatprep.subr.bf16.mxu1 %v3398_v51  ;;  %v3465_v41 = vld [vmem:[#allocation8 + $0x188] ss:$16 sps:$4 sm:$0xff]   ;;  %v3473_v51 = vld [vmem:[#allocation8 + $0x16c] ss:$16 sps:$4 sm:$0xff]  }
 0x157   :  { %2102 = vmatpush2.bf16.msra.mxu0 %v3393_v8  ;;  %2143 = vmatpush2.bf16.msra.mxu1 %v3396_v53  ;;  %v3476_v8 = vld [vmem:[#allocation8 + $0x36c] ss:$16 sps:$4 sm:$0xff]   ;;  %v3474_v53 = vld [vmem:[#allocation8 + $0x368] ss:$16 sps:$4 sm:$0xff]  }
 0x158   :  { %2153 = vmatprep.subr.bf16.mxu0 %v3401_v54  ;;  %2194 = vmatprep.subr.bf16.mxu1 %v3404_v55  ;;  %v3479_v54 = vld [vmem:[#allocation8 + $0x14c] ss:$16 sps:$4 sm:$0xff]   ;;  %v3477_v55 = vld [vmem:[#allocation8 + $0x148] ss:$16 sps:$4 sm:$0xff]  }
 0x15a   :  { %2104 = vmatmul.mubr.bf16.vlgmr.msra.gmra.mxu0 %v3932_v57  ;;  %2145 = vmatmul.mubr.bf16.vlgmr.msra.gmra.mxu1 %v3934_v59 }
 0x15b   :  { %2154 = vmatpush1.bf16.msra.mxu0 %v3399_v56  ;;  %2185 = vmatprep.mubr.bf16.mxu0 %v3906_v10  ;;  %v3420_v10 = vld [vmem:[#allocation8 + $0x288] ss:$16 sps:$4 sm:$0xff]  }
 0x15c   :  { %2195 = vmatpush1.bf16.msra.mxu1 %v3402_v58  ;;  %2226 = vmatprep.mubr.bf16.mxu1 %v3912_v14  ;;  %v3423_v14 = vld [vmem:[#allocation8 + $0x68] ss:$16 sps:$4 sm:$0xff]   ;;  %v3485_v58 = vld [vmem:[#allocation8 + $0x12c] ss:$16 sps:$4 sm:$0xff]  }
 0x15d   :  { %2155 = vmatprep.subr.bf16.mxu0 %v3407_v60  ;;  %2196 = vmatprep.subr.bf16.mxu1 %v3410_v61  ;;  %v3480_v56 = vld [vmem:[#allocation8 + $0x348] ss:$16 sps:$4 sm:$0xff]   ;;  %v3488_v60 = vld [vmem:[#allocation8 + $0x32c] ss:$16 sps:$4 sm:$0xff]  }
 0x15e   :  { %v3483_v61 = vld [vmem:[#allocation8 + $0x128] ss:$16 sps:$4 sm:$0xff]  }
 0x15f   :  { %2156 = vmatpush1.bf16.msra.mxu0 %v3405_v62  ;;  %v3486_v62 = vld [vmem:[#allocation8 + $0x328] ss:$16 sps:$4 sm:$0xff]  }
 0x160   :  { %2197 = vmatpush1.bf16.msra.mxu1 %v3408_v63  ;;  %2157 = vmatprep.subr.bf16.mxu0 %v3413_v0  ;;  %v3491_v63 = vld [vmem:[#allocation8 + $0x10c] ss:$16 sps:$4 sm:$0xff]  }
 0x161   :  { %2198 = vmatprep.subr.bf16.mxu1 %v3416_v1  ;;  %v3494_v0 = vld [vmem:[#allocation8 + $0x30c] ss:$16 sps:$4 sm:$0xff]   ;;  %v3489_v1 = vld [vmem:[#allocation8 + $0x108] ss:$16 sps:$4 sm:$0xff]  }
 0x163   :  { %2158 = vmatpush1.bf16.msra.mxu0 %v3411_v2  ;;  %v3492_v2 = vld [vmem:[#allocation8 + $0x308] ss:$16 sps:$4 sm:$0xff]  }
 0x164   :  { %2199 = vmatpush1.bf16.msra.mxu1 %v3414_v3  ;;  %2159 = vmatprep.subr.bf16.mxu0 %v3419_v4  ;;  %v3497_v3 = vld [vmem:[#allocation8 + $0x4ec] ss:$16 sps:$4 sm:$0xff]  }
 0x165   :  { %2200 = vmatprep.subr.bf16.mxu1 %v3422_v5  ;;  %v3500_v4 = vld [vmem:[#allocation8 + $0x6ec] ss:$16 sps:$4 sm:$0xff]   ;;  %v3495_v5 = vld [vmem:[#allocation8 + $0x4e8] ss:$16 sps:$4 sm:$0xff]  }
 0x167   :  { %2160 = vmatpush1.bf16.msra.mxu0 %v3417_v6  ;;  %v3498_v6 = vld [vmem:[#allocation8 + $0x6e8] ss:$16 sps:$4 sm:$0xff]  }
 0x168   :  { %2201 = vmatpush1.bf16.msra.mxu1 %v3420_v10  ;;  %2161 = vmatprep.subr.bf16.mxu0 %v3425_v7  ;;  %v3503_v10 = vld [vmem:[#allocation8 + $0x4cc] ss:$16 sps:$4 sm:$0xff]  }
 0x169   :  { %2202 = vmatprep.subr.bf16.mxu1 %v3428_v9  ;;  %v3506_v7 = vld [vmem:[#allocation8 + $0x6cc] ss:$16 sps:$4 sm:$0xff]   ;;  %v3501_v9 = vld [vmem:[#allocation8 + $0x4c8] ss:$16 sps:$4 sm:$0xff]  }
 0x16b   :  { %2162 = vmatpush1.bf16.msra.mxu0 %v3423_v14  ;;  %v3504_v14 = vld [vmem:[#allocation8 + $0x6c8] ss:$16 sps:$4 sm:$0xff]  }
 0x16c   :  { %2203 = vmatpush1.bf16.msra.mxu1 %v3426_v11  ;;  %2163 = vmatprep.subr.bf16.mxu0 %v3431_v15  ;;  %v3509_v11 = vld [vmem:[#allocation8 + $0x4ac] ss:$16 sps:$4 sm:$0xff]  }
 0x16d   :  { %2204 = vmatprep.subr.bf16.mxu1 %v3434_v16  ;;  %v3512_v15 = vld [vmem:[#allocation8 + $0x6ac] ss:$16 sps:$4 sm:$0xff]   ;;  %v3507_v16 = vld [vmem:[#allocation8 + $0x4a8] ss:$16 sps:$4 sm:$0xff]  }
 0x16f   :  { %2164 = vmatpush1.bf16.msra.mxu0 %v3429_v17  ;;  %v3515_v17 = vld [vmem:[#allocation8 + $0x48c] ss:$16 sps:$4 sm:$0xff]  }
 0x170   :  { %2205 = vmatpush1.bf16.msra.mxu1 %v3432_v19  ;;  %2165 = vmatprep.subr.bf16.mxu0 %v3437_v20  ;;  %v3513_v19 = vld [vmem:[#allocation8 + $0x488] ss:$16 sps:$4 sm:$0xff]   ;;  %v3521_v20 = vld [vmem:[#allocation8 + $0x46c] ss:$16 sps:$4 sm:$0xff]  }
 0x171   :  { %2206 = vmatprep.subr.bf16.mxu1 %v3440_v21  ;;  %v3524_v21 = vld [vmem:[#allocation8 + $0x66c] ss:$16 sps:$4 sm:$0xff]  }
 0x173   :  { %2166 = vmatpush1.bf16.msra.mxu0 %v3435_v22  ;;  %v3522_v22 = vld [vmem:[#allocation8 + $0x668] ss:$16 sps:$4 sm:$0xff]  }
 0x174   :  { %2207 = vmatpush1.bf16.msra.mxu1 %v3438_v23  ;;  %2167 = vmatprep.subr.bf16.mxu0 %v3443_v24  ;;  %v3527_v23 = vld [vmem:[#allocation8 + $0x44c] ss:$16 sps:$4 sm:$0xff]  }
 0x175   :  { %2208 = vmatprep.subr.bf16.mxu1 %v3446_v25  ;;  %v3530_v24 = vld [vmem:[#allocation8 + $0x64c] ss:$16 sps:$4 sm:$0xff]   ;;  %v3525_v25 = vld [vmem:[#allocation8 + $0x448] ss:$16 sps:$4 sm:$0xff]  }
 0x177   :  { %2168 = vmatpush1.bf16.msra.mxu0 %v3441_v26  ;;  %v3528_v26 = vld [vmem:[#allocation8 + $0x648] ss:$16 sps:$4 sm:$0xff]  }
 0x178   :  { %2209 = vmatpush1.bf16.msra.mxu1 %v3444_v27  ;;  %2169 = vmatprep.subr.bf16.mxu0 %v3449_v28  ;;  %v3533_v27 = vld [vmem:[#allocation8 + $0x42c] ss:$16 sps:$4 sm:$0xff]  }
 0x179   :  { %2210 = vmatprep.subr.bf16.mxu1 %v3452_v29  ;;  %v3536_v28 = vld [vmem:[#allocation8 + $0x62c] ss:$16 sps:$4 sm:$0xff]   ;;  %v3531_v29 = vld [vmem:[#allocation8 + $0x428] ss:$16 sps:$4 sm:$0xff]  }
 0x17b   :  { %2170 = vmatpush2.bf16.msra.mxu0 %v3447_v30  ;;  %v3534_v30 = vld [vmem:[#allocation8 + $0x628] ss:$16 sps:$4 sm:$0xff]  }
 0x17c   :  { %2211 = vmatpush2.bf16.msra.mxu1 %v3450_v31  ;;  %2171 = vmatprep.subr.bf16.mxu0 %v3455_v32  ;;  %v3539_v31 = vld [vmem:[#allocation8 + $0x40c] ss:$16 sps:$4 sm:$0xff]  }
 0x17d   :  { %2212 = vmatprep.subr.bf16.mxu1 %v3458_v33  ;;  %v3542_v32 = vld [vmem:[#allocation8 + $0x60c] ss:$16 sps:$4 sm:$0xff]   ;;  %v3537_v33 = vld [vmem:[#allocation8 + $0x408] ss:$16 sps:$4 sm:$0xff]  }
 0x17f   :  { %2172 = vmatpush2.bf16.msra.mxu0 %v3453_v34  ;;  %v3540_v34 = vld [vmem:[#allocation8 + $0x608] ss:$16 sps:$4 sm:$0xff]  }
 0x180   :  { %2213 = vmatpush2.bf16.msra.mxu1 %v3456_v35  ;;  %2173 = vmatprep.subr.bf16.mxu0 %v3461_v37  ;;  %v3545_v35 = vld [vmem:[#allocation8 + $0x5ec] ss:$16 sps:$4 sm:$0xff]  }
 0x181   :  { %2214 = vmatprep.subr.bf16.mxu1 %v3464_v38  ;;  %v3548_v37 = vld [vmem:[#allocation8 + $0x7ec] ss:$16 sps:$4 sm:$0xff]   ;;  %v3543_v38 = vld [vmem:[#allocation8 + $0x5e8] ss:$16 sps:$4 sm:$0xff]  }
 0x183   :  { %2174 = vmatpush2.bf16.msra.mxu0 %v3459_v46  ;;  %v3546_v46 = vld [vmem:[#allocation8 + $0x7e8] ss:$16 sps:$4 sm:$0xff]  }
 0x184   :  { %2215 = vmatpush2.bf16.msra.mxu1 %v3462_v47  ;;  %2175 = vmatprep.subr.bf16.mxu0 %v3467_v48  ;;  %v3551_v47 = vld [vmem:[#allocation8 + $0x5cc] ss:$16 sps:$4 sm:$0xff]  }
 0x185   :  { %2216 = vmatprep.subr.bf16.mxu1 %v3470_v49  ;;  %v3554_v48 = vld [vmem:[#allocation8 + $0x7cc] ss:$16 sps:$4 sm:$0xff]   ;;  %v3549_v49 = vld [vmem:[#allocation8 + $0x5c8] ss:$16 sps:$4 sm:$0xff]  }
 0x187   :  { %2176 = vmatpush2.bf16.msra.mxu0 %v3465_v41  ;;  %v3552_v41 = vld [vmem:[#allocation8 + $0x7c8] ss:$16 sps:$4 sm:$0xff]  }
 0x188   :  { %2217 = vmatpush2.bf16.msra.mxu1 %v3468_v50  ;;  %2177 = vmatprep.subr.bf16.mxu0 %v3473_v51  ;;  %v3557_v50 = vld [vmem:[#allocation8 + $0x5ac] ss:$16 sps:$4 sm:$0xff]  }
 0x189   :  { %2218 = vmatprep.subr.bf16.mxu1 %v3476_v8  ;;  %v3560_v51 = vld [vmem:[#allocation8 + $0x7ac] ss:$16 sps:$4 sm:$0xff]   ;;  %v3555_v8 = vld [vmem:[#allocation8 + $0x5a8] ss:$16 sps:$4 sm:$0xff]  }
 0x18b   :  { %2178 = vmatpush2.bf16.msra.mxu0 %v3471_v52  ;;  %v3558_v52 = vld [vmem:[#allocation8 + $0x7a8] ss:$16 sps:$4 sm:$0xff]  }
 0x18c   :  { %2219 = vmatpush2.bf16.msra.mxu1 %v3474_v53  ;;  %2179 = vmatprep.subr.bf16.mxu0 %v3479_v54  ;;  %v3563_v53 = vld [vmem:[#allocation8 + $0x58c] ss:$16 sps:$4 sm:$0xff]  }
 0x18d   :  { %2220 = vmatprep.subr.bf16.mxu1 %v3482_v12  ;;  %v3566_v54 = vld [vmem:[#allocation8 + $0x78c] ss:$16 sps:$4 sm:$0xff]   ;;  %v3561_v12 = vld [vmem:[#allocation8 + $0x588] ss:$16 sps:$4 sm:$0xff]  }
 0x18f   :  { %2180 = vmatpush2.bf16.msra.mxu0 %v3477_v55  ;;  %v3564_v55 = vld [vmem:[#allocation8 + $0x788] ss:$16 sps:$4 sm:$0xff]  }
 0x190   :  { %2221 = vmatpush2.bf16.msra.mxu1 %v3480_v56  ;;  %2181 = vmatprep.subr.bf16.mxu0 %v3485_v58  ;;  %v3569_v56 = vld [vmem:[#allocation8 + $0x56c] ss:$16 sps:$4 sm:$0xff]  }
 0x191   :  { %2222 = vmatprep.subr.bf16.mxu1 %v3488_v60  ;;  %v3572_v58 = vld [vmem:[#allocation8 + $0x76c] ss:$16 sps:$4 sm:$0xff]   ;;  %v3567_v60 = vld [vmem:[#allocation8 + $0x568] ss:$16 sps:$4 sm:$0xff]  }
 0x193   :  { %2182 = vmatpush2.bf16.msra.mxu0 %v3483_v61  ;;  %v3570_v61 = vld [vmem:[#allocation8 + $0x768] ss:$16 sps:$4 sm:$0xff]  }
 0x194   :  { %2223 = vmatpush2.bf16.msra.mxu1 %v3486_v62  ;;  %2183 = vmatprep.subr.bf16.mxu0 %v3491_v63  ;;  %v3575_v62 = vld [vmem:[#allocation8 + $0x54c] ss:$16 sps:$4 sm:$0xff]  }
 0x195   :  { %2224 = vmatprep.subr.bf16.mxu1 %v3494_v0  ;;  %v3578_v63 = vld [vmem:[#allocation8 + $0x74c] ss:$16 sps:$4 sm:$0xff]   ;;  %v3573_v0 = vld [vmem:[#allocation8 + $0x548] ss:$16 sps:$4 sm:$0xff]  }
 0x197   :  { %2184 = vmatpush2.bf16.msra.mxu0 %v3489_v1  ;;  %v3576_v1 = vld [vmem:[#allocation8 + $0x748] ss:$16 sps:$4 sm:$0xff]  }
 0x198   :  { %2225 = vmatpush2.bf16.msra.mxu1 %v3492_v2  ;;  %2235 = vmatprep.subr.bf16.mxu0 %v3497_v3  ;;  %v3581_v2 = vld [vmem:[#allocation8 + $0x52c] ss:$16 sps:$4 sm:$0xff]  }
 0x199   :  { %2276 = vmatprep.subr.bf16.mxu1 %v3500_v4  ;;  %v3584_v3 = vld [vmem:[#allocation8 + $0x72c] ss:$16 sps:$4 sm:$0xff]   ;;  %v3579_v4 = vld [vmem:[#allocation8 + $0x528] ss:$16 sps:$4 sm:$0xff]  }
 0x19a   :  { %2186 = vmatmul.mubr.bf16.vlgmr.msra.gmra.mxu0 %v3910_v13  ;;  %v3510_v13 = vld [vmem:[#allocation8 + $0x6a8] ss:$16 sps:$4 sm:$0xff]  }
 0x19b   :  { %2227 = vmatmul.mubr.bf16.vlgmr.msra.gmra.mxu1 %v3914_v18  ;;  %2236 = vmatpush1.bf16.msra.mxu0 %v3495_v5  ;;  %v3518_v18 = vld [vmem:[#allocation8 + $0x68c] ss:$16 sps:$4 sm:$0xff]   ;;  %v3582_v5 = vld [vmem:[#allocation8 + $0x728] ss:$16 sps:$4 sm:$0xff]  }
 0x19c   :  { %2267 = vmatprep.mubr.bf16.mxu0 %v3920_v36  ;;  %2277 = vmatpush1.bf16.msra.mxu1 %v3498_v6  ;;  %v3516_v36 = vld [vmem:[#allocation8 + $0x688] ss:$16 sps:$4 sm:$0xff]   ;;  %v3587_v6 = vld [vmem:[#allocation8 + $0x50c] ss:$16 sps:$4 sm:$0xff]  }
 0x19d   :  { %2308 = vmatprep.mubr.bf16.mxu1 %v3922_v45  ;;  %2237 = vmatprep.subr.bf16.mxu0 %v3503_v10  ;;  %v3519_v45 = vld [vmem:[#allocation8 + $0x468] ss:$16 sps:$4 sm:$0xff]   ;;  %v3590_v10 = vld [vmem:[#allocation8 + $0x70c] ss:$16 sps:$4 sm:$0xff]  }
 0x19e   :  { %2278 = vmatprep.subr.bf16.mxu1 %v3506_v7  ;;  %v3585_v7 = vld [vmem:[#allocation8 + $0x508] ss:$16 sps:$4 sm:$0xff]  }
 0x19f   :  { %2238 = vmatpush1.bf16.msra.mxu0 %v3501_v9  ;;  %v3588_v9 = vld [vmem:[#allocation8 + $0x708] ss:$16 sps:$4 sm:$0xff]  }
 0x1a0   :  { %2279 = vmatpush1.bf16.msra.mxu1 %v3504_v14  ;;  %2239 = vmatprep.subr.bf16.mxu0 %v3509_v11  ;;  %v3593_v14 = vld [vmem:[#allocation10 + $0x74] ss:$8 sps:$4 sm:$0xff]   ;;  %v3591_v11 = vld [vmem:[#allocation10 + $0x70] ss:$8 sps:$4 sm:$0xff]  }
 0x1a1   :  { %2280 = vmatprep.subr.bf16.mxu1 %v3512_v15  ;;  %v3596_v15 = vld [vmem:[#allocation10 + $0x64] ss:$8 sps:$4 sm:$0xff]  }
 0x1a3   :  { %2240 = vmatpush1.bf16.msra.mxu0 %v3507_v16 }
 0x1a4   :  { %2281 = vmatpush1.bf16.msra.mxu1 %v3510_v13  ;;  %2241 = vmatprep.subr.bf16.mxu0 %v3515_v17  ;;  %v3594_v17 = vld [vmem:[#allocation10 + $0x60] ss:$8 sps:$4 sm:$0xff]  }
 0x1a5   :  { %2282 = vmatprep.subr.bf16.mxu1 %v3518_v18 }
 0x1a7   :  { %2242 = vmatpush1.bf16.msra.mxu0 %v3513_v19  ;;  %v3599_v19 = vld [vmem:[#allocation10 + $0x54] ss:$8 sps:$4 sm:$0xff]  }
 0x1a8   :  { %2283 = vmatpush1.bf16.msra.mxu1 %v3516_v36  ;;  %2243 = vmatprep.subr.bf16.mxu0 %v3521_v20 }
 0x1a9   :  { %2284 = vmatprep.subr.bf16.mxu1 %v3524_v21 }
 0x1ab   :  { %2244 = vmatpush1.bf16.msra.mxu0 %v3519_v45  ;;  %v3597_v45 = vld [vmem:[#allocation10 + $0x50] ss:$8 sps:$4 sm:$0xff]  }
 0x1ac   :  { %2285 = vmatpush1.bf16.msra.mxu1 %v3522_v22  ;;  %2245 = vmatprep.subr.bf16.mxu0 %v3527_v23 }
 0x1ad   :  { %2286 = vmatprep.subr.bf16.mxu1 %v3530_v24  ;;  %v3639_v24 = vld [vmem:[#allocation10 + $0x170] ss:$8 sps:$4 sm:$0xff]  }
 0x1af   :  { %2246 = vmatpush1.bf16.msra.mxu0 %v3525_v25  ;;  %v3644_v25 = vld [vmem:[#allocation10 + $0x164] ss:$8 sps:$4 sm:$0xff]  }
 0x1b0   :  { %2287 = vmatpush1.bf16.msra.mxu1 %v3528_v26  ;;  %2247 = vmatprep.subr.bf16.mxu0 %v3533_v27  ;;  %v3600_v26 = vld [vmem:[#allocation10 + $0x40] ss:$8 sps:$4 sm:$0xff]   ;;  %v3605_v27 = vld [vmem:[#allocation10 + $0x34] ss:$8 sps:$4 sm:$0xff]  }
 0x1b1   :  { %2288 = vmatprep.subr.bf16.mxu1 %v3536_v28  ;;  %v3642_v28 = vld [vmem:[#allocation10 + $0x160] ss:$8 sps:$4 sm:$0xff]  }
 0x1b3   :  { %2248 = vmatpush1.bf16.msra.mxu0 %v3531_v29  ;;  %v3647_v29 = vld [vmem:[#allocation10 + $0x154] ss:$8 sps:$4 sm:$0xff]  }
 0x1b4   :  { %2289 = vmatpush1.bf16.msra.mxu1 %v3534_v30  ;;  %2249 = vmatprep.subr.bf16.mxu0 %v3539_v31  ;;  %v3603_v30 = vld [vmem:[#allocation10 + $0x30] ss:$8 sps:$4 sm:$0xff]   ;;  %v3608_v31 = vld [vmem:[#allocation10 + $0x24] ss:$8 sps:$4 sm:$0xff]  }
 0x1b5   :  { %2290 = vmatprep.subr.bf16.mxu1 %v3542_v32  ;;  %v3645_v32 = vld [vmem:[#allocation10 + $0x150] ss:$8 sps:$4 sm:$0xff]  }
 0x1b7   :  { %2250 = vmatpush1.bf16.msra.mxu0 %v3537_v33  ;;  %v3650_v33 = vld [vmem:[#allocation10 + $0x144] ss:$8 sps:$4 sm:$0xff]  }
 0x1b8   :  { %2291 = vmatpush1.bf16.msra.mxu1 %v3540_v34  ;;  %2251 = vmatprep.subr.bf16.mxu0 %v3545_v35  ;;  %v3606_v34 = vld [vmem:[#allocation10 + $0x20] ss:$8 sps:$4 sm:$0xff]   ;;  %v3611_v35 = vld [vmem:[#allocation10 + $0x14] ss:$8 sps:$4 sm:$0xff]  }
 0x1b9   :  { %2292 = vmatprep.subr.bf16.mxu1 %v3548_v37  ;;  %v3648_v37 = vld [vmem:[#allocation10 + $0x140] ss:$8 sps:$4 sm:$0xff]  }
 0x1bb   :  { %2252 = vmatpush2.bf16.msra.mxu0 %v3543_v38  ;;  %v3653_v38 = vld [vmem:[#allocation10 + $0x134] ss:$8 sps:$4 sm:$0xff]  }
 0x1bc   :  { %2293 = vmatpush2.bf16.msra.mxu1 %v3546_v46  ;;  %2253 = vmatprep.subr.bf16.mxu0 %v3551_v47  ;;  %v3609_v46 = vld [vmem:[#allocation10 + $0x10] ss:$8 sps:$4 sm:$0xff]   ;;  %v3614_v47 = vld [vmem:[#allocation10 + $0x4] ss:$8 sps:$4 sm:$0xff]  }
 0x1bd   :  { %2294 = vmatprep.subr.bf16.mxu1 %v3554_v48  ;;  %v3651_v48 = vld [vmem:[#allocation10 + $0x130] ss:$8 sps:$4 sm:$0xff]  }
 0x1bf   :  { %2254 = vmatpush2.bf16.msra.mxu0 %v3549_v49  ;;  %v3656_v49 = vld [vmem:[#allocation10 + $0x124] ss:$8 sps:$4 sm:$0xff]  }
 0x1c0   :  { %2295 = vmatpush2.bf16.msra.mxu1 %v3552_v41  ;;  %2255 = vmatprep.subr.bf16.mxu0 %v3557_v50  ;;  %v3612_v41 = vld [vmem:[#allocation10] ss:$8 sps:$4 sm:$0xff]   ;;  %v3617_v50 = vld [vmem:[#allocation10 + $0xf4] ss:$8 sps:$4 sm:$0xff]  }
 0x1c1   :  { %2296 = vmatprep.subr.bf16.mxu1 %v3560_v51  ;;  %v3654_v51 = vld [vmem:[#allocation10 + $0x120] ss:$8 sps:$4 sm:$0xff]  }
 0x1c3   :  { %2256 = vmatpush2.bf16.msra.mxu0 %v3555_v8  ;;  %v3659_v8 = vld [vmem:[#allocation10 + $0x114] ss:$8 sps:$4 sm:$0xff]  }
 0x1c4   :  { %2297 = vmatpush2.bf16.msra.mxu1 %v3558_v52  ;;  %2257 = vmatprep.subr.bf16.mxu0 %v3563_v53  ;;  %v3615_v52 = vld [vmem:[#allocation10 + $0xf0] ss:$8 sps:$4 sm:$0xff]   ;;  %v3620_v53 = vld [vmem:[#allocation10 + $0xe4] ss:$8 sps:$4 sm:$0xff]  }
 0x1c5   :  { %2298 = vmatprep.subr.bf16.mxu1 %v3566_v54  ;;  %v3657_v54 = vld [vmem:[#allocation10 + $0x110] ss:$8 sps:$4 sm:$0xff]  }
 0x1c7   :  { %2258 = vmatpush2.bf16.msra.mxu0 %v3561_v12  ;;  %v3662_v12 = vld [vmem:[#allocation10 + $0x104] ss:$8 sps:$4 sm:$0xff]  }
 0x1c8   :  { %2299 = vmatpush2.bf16.msra.mxu1 %v3564_v55  ;;  %2259 = vmatprep.subr.bf16.mxu0 %v3569_v56  ;;  %v3618_v55 = vld [vmem:[#allocation10 + $0xe0] ss:$8 sps:$4 sm:$0xff]   ;;  %v3623_v56 = vld [vmem:[#allocation10 + $0xd4] ss:$8 sps:$4 sm:$0xff]  }
 0x1c9   :  { %2300 = vmatprep.subr.bf16.mxu1 %v3572_v58  ;;  %v3660_v58 = vld [vmem:[#allocation10 + $0x100] ss:$8 sps:$4 sm:$0xff]  }
 0x1cb   :  { %2260 = vmatpush2.bf16.msra.mxu0 %v3567_v60  ;;  %v3665_v60 = vld [vmem:[#allocation10 + $0x1f4] ss:$8 sps:$4 sm:$0xff]  }
 0x1cc   :  { %2301 = vmatpush2.bf16.msra.mxu1 %v3570_v61  ;;  %2261 = vmatprep.subr.bf16.mxu0 %v3575_v62  ;;  %v3621_v61 = vld [vmem:[#allocation10 + $0xd0] ss:$8 sps:$4 sm:$0xff]   ;;  %v3626_v62 = vld [vmem:[#allocation10 + $0xc4] ss:$8 sps:$4 sm:$0xff]  }
 0x1cd   :  { %2302 = vmatprep.subr.bf16.mxu1 %v3578_v63  ;;  %v3663_v63 = vld [vmem:[#allocation10 + $0x1f0] ss:$8 sps:$4 sm:$0xff]  }
 0x1cf   :  { %2262 = vmatpush2.bf16.msra.mxu0 %v3573_v0  ;;  %v3668_v0 = vld [vmem:[#allocation10 + $0x1e4] ss:$8 sps:$4 sm:$0xff]  }
 0x1d0   :  { %2303 = vmatpush2.bf16.msra.mxu1 %v3576_v1  ;;  %2263 = vmatprep.subr.bf16.mxu0 %v3581_v2  ;;  %v3624_v1 = vld [vmem:[#allocation10 + $0xc0] ss:$8 sps:$4 sm:$0xff]   ;;  %v3629_v2 = vld [vmem:[#allocation10 + $0xb4] ss:$8 sps:$4 sm:$0xff]  }
 0x1d1   :  { %2304 = vmatprep.subr.bf16.mxu1 %v3584_v3  ;;  %v3666_v3 = vld [vmem:[#allocation10 + $0x1e0] ss:$8 sps:$4 sm:$0xff]  }
 0x1d3   :  { %2264 = vmatpush2.bf16.msra.mxu0 %v3579_v4  ;;  %v3671_v4 = vld [vmem:[#allocation10 + $0x1d4] ss:$8 sps:$4 sm:$0xff]  }
 0x1d4   :  { %2305 = vmatpush2.bf16.msra.mxu1 %v3582_v5  ;;  %2265 = vmatprep.subr.bf16.mxu0 %v3587_v6  ;;  %v3627_v5 = vld [vmem:[#allocation10 + $0xb0] ss:$8 sps:$4 sm:$0xff]   ;;  %v3632_v6 = vld [vmem:[#allocation10 + $0xa4] ss:$8 sps:$4 sm:$0xff]  }
 0x1d5   :  { %2306 = vmatprep.subr.bf16.mxu1 %v3590_v10  ;;  %v3669_v10 = vld [vmem:[#allocation10 + $0x1d0] ss:$8 sps:$4 sm:$0xff]  }
 0x1d7   :  { %2266 = vmatpush2.bf16.msra.mxu0 %v3585_v7  ;;  %v3674_v7 = vld [vmem:[#allocation10 + $0x1c4] ss:$8 sps:$4 sm:$0xff]  }
 0x1d8   :  { %2307 = vmatpush2.bf16.msra.mxu1 %v3588_v9  ;;  %2725 = vmatprep.subr.bf16.mxu0 %v3593_v14  ;;  %v3630_v9 = vld [vmem:[#allocation10 + $0xa0] ss:$8 sps:$4 sm:$0xff]   ;;  %v3635_v14 = vld [vmem:[#allocation10 + $0x94] ss:$8 sps:$4 sm:$0xff]  }
 0x1da   :  { %2268 = vmatmul.mubr.bf16.vlgmr.msra.gmra.mxu0 %v3932_v57  ;;  %v3945_v16 = vpop.f32.mrf.mxu0  ;;  %v3948_v13 = vpop.f32.mrf.mxu1  ;;  %v3602_v57 = vld [vmem:[#allocation10 + $0x44] ss:$8 sps:$4 sm:$0xff]  }
 0x1db   :  { %2309 = vmatmul.mubr.bf16.vlgmr.msra.gmra.mxu1 %v3934_v59  ;;  %2726 = vmatpush1.bf16.msra.mxu0 %v3591_v11  ;;  %v3641_v59 = vld [vmem:[#allocation10 + $0x174] ss:$8 sps:$4 sm:$0xff]   ;;  %v3672_v11 = vld [vmem:[#allocation10 + $0x1c0] ss:$8 sps:$4 sm:$0xff]  }
 0x1dc   :  { %v3950_v18 = vpop.f32.mrf.mxu0  ;;  %2727 = vmatprep.subr.bf16.mxu0 %v3596_v15  ;;  %v3952_v36 = vpop.f32.mrf.mxu1  ;;  %2766 = vmatprep.subr.bf16.mxu1 %v3641_v59  ;;  %v3677_v15 = vld [vmem:[#allocation10 + $0x1b4] ss:$8 sps:$4 sm:$0xff]  }
 0x1dd   :  { %2767 = vmatpush1.bf16.msra.mxu1 %v3639_v24 }
 0x1de   :  { %v2027_v20 = vpop.f32.mrf.mxu0  ;;  %v2068_v21 = vpop.f32.mrf.mxu1  ;;  %2768 = vmatprep.subr.bf16.mxu1 %v3644_v25 }
 0x1df   :  { %2728 = vmatpush1.bf16.msra.mxu0 %v3594_v17  ;;  %v687_v17 = vld [vmem:[%s3985_s4] sm:$0xf] }
 0x1e0   :  { %v2028_v22 = vpop.f32.mrf.mxu0  ;;  %2729 = vmatprep.subr.bf16.mxu0 %v3599_v19  ;;  %v2069_v23 = vpop.f32.mrf.mxu1  ;;  %v3633_v19 = vld [vmem:[#allocation10 + $0x90] ss:$8 sps:$4 sm:$0xff]   ;;  %v3638_v20 = vld [vmem:[#allocation10 + $0x84] ss:$8 sps:$4 sm:$0xff]  }
 0x1e1   :  { %2769 = vmatpush1.bf16.msra.mxu1 %v3642_v28  ;;  %v3675_v21 = vld [vmem:[#allocation10 + $0x1b0] ss:$8 sps:$4 sm:$0xff]   ;;  %v696_v22 = vrot.slane %v687_v17, %v3888_v43 }
 0x1e2   :  { %2770 = vmatprep.subr.bf16.mxu1 %v3647_v29 }
 0x1e3   :  { %2730 = vmatpush1.bf16.msra.mxu0 %v3597_v45  ;;  %v692_v45 = vrot.slane %v687_v17, %v3880_v40  ;;  %v2026_v24 = vadd.f32 %v3950_v18, %v696_v22 }
 0x1e4   :  { %2731 = vmatprep.subr.bf16.mxu0 %v3602_v57  ;;  %v3636_v57 = vld [vmem:[#allocation10 + $0x80] ss:$8 sps:$4 sm:$0xff]  }
 0x1e5   :  { %2771 = vmatpush1.bf16.msra.mxu1 %v3645_v32  ;;  %v2024_v23 = vadd.f32 %v3945_v16, %v692_v45 }
 0x1e6   :  { %2772 = vmatprep.subr.bf16.mxu1 %v3650_v33 }
 0x1e7   :  { %2732 = vmatpush1.bf16.msra.mxu0 %v3600_v26  ;;  %v2065_v59 = vadd.f32 %v3948_v13, %v2024_v23  ;;  %v2067_v26 = vadd.f32 %v3952_v36, %v2026_v24 }
 0x1e8   :  { %2733 = vmatprep.subr.bf16.mxu0 %v3605_v27 }
 0x1e9   :  { %2773 = vmatpush1.bf16.msra.mxu1 %v3648_v37 }
 0x1ea   :  { %2774 = vmatprep.subr.bf16.mxu1 %v3653_v38 }
 0x1eb   :  { %2734 = vmatpush1.bf16.msra.mxu0 %v3603_v30  ;;  %v3680_v30 = vld [vmem:[#allocation10 + $0x1a4] ss:$8 sps:$4 sm:$0xff]  }
 0x1ec   :  { %2735 = vmatprep.subr.bf16.mxu0 %v3608_v31 }
 0x1ed   :  { %2775 = vmatpush1.bf16.msra.mxu1 %v3651_v48  ;;  %v3681_v48 = vld [vmem:[#allocation10 + $0x190] ss:$8 sps:$4 sm:$0xff]  }
 0x1ee   :  { %2776 = vmatprep.subr.bf16.mxu1 %v3656_v49 }
 0x1ef   :  { %2736 = vmatpush1.bf16.msra.mxu0 %v3606_v34  ;;  %v3678_v34 = vld [vmem:[#allocation10 + $0x1a0] ss:$8 sps:$4 sm:$0xff]  }
 0x1f0   :  { %2737 = vmatprep.subr.bf16.mxu0 %v3611_v35 }
 0x1f1   :  { %2777 = vmatpush1.bf16.msra.mxu1 %v3654_v51  ;;  %v3684_v51 = vld [vmem:[#allocation10 + $0x180] ss:$8 sps:$4 sm:$0xff]  }
 0x1f2   :  { %2778 = vmatprep.subr.bf16.mxu1 %v3659_v8 }
 0x1f3   :  { %2738 = vmatpush1.bf16.msra.mxu0 %v3609_v46  ;;  %v3683_v46 = vld [vmem:[#allocation10 + $0x194] ss:$8 sps:$4 sm:$0xff]  }
 0x1f4   :  { %2739 = vmatprep.subr.bf16.mxu0 %v3614_v47 }
 0x1f5   :  { %2779 = vmatpush1.bf16.msra.mxu1 %v3657_v54 }
 0x1f6   :  { %2780 = vmatprep.subr.bf16.mxu1 %v3662_v12 }
 0x1f7   :  { %2740 = vmatpush1.bf16.msra.mxu0 %v3612_v41  ;;  %v3686_v41 = vld [vmem:[#allocation10 + $0x184] ss:$8 sps:$4 sm:$0xff]  }
 0x1f8   :  { %2741 = vmatprep.subr.bf16.mxu0 %v3617_v50 }
 0x1f9   :  { %2781 = vmatpush1.bf16.msra.mxu1 %v3660_v58 }
 0x1fa   :  { %2782 = vmatprep.subr.bf16.mxu1 %v3665_v60 }
 0x1fb   :  { %2742 = vmatpush2.bf16.msra.mxu0 %v3615_v52 }
 0x1fc   :  { %2743 = vmatprep.subr.bf16.mxu0 %v3620_v53 }
 0x1fd   :  { %2783 = vmatpush2.bf16.msra.mxu1 %v3663_v63 }
 0x1fe   :  { %2784 = vmatprep.subr.bf16.mxu1 %v3668_v0 }
 0x1ff   :  { %2744 = vmatpush2.bf16.msra.mxu0 %v3618_v55 }
 0x200   :  { %2745 = vmatprep.subr.bf16.mxu0 %v3623_v56 }
 0x201   :  { %2785 = vmatpush2.bf16.msra.mxu1 %v3666_v3 }
 0x202   :  { %2786 = vmatprep.subr.bf16.mxu1 %v3671_v4 }
 0x203   :  { %2746 = vmatpush2.bf16.msra.mxu0 %v3621_v61  ;;  %v700_v61 = vrot.slane %v687_v17, %v3885_v42 }
 0x204   :  { %2747 = vmatprep.subr.bf16.mxu0 %v3626_v62  ;;  %v704_v62 = vrot.slane %v687_v17, %v133_v44 }
 0x205   :  { %2787 = vmatpush2.bf16.msra.mxu1 %v3669_v10 }
 0x206   :  { %2788 = vmatprep.subr.bf16.mxu1 %v3674_v7 }
 0x207   :  { %2748 = vmatpush2.bf16.msra.mxu0 %v3624_v1 }
 0x208   :  { %2749 = vmatprep.subr.bf16.mxu0 %v3629_v2 }
 0x209   :  { %2789 = vmatpush2.bf16.msra.mxu1 %v3672_v11 }
 0x20a   :  { %2790 = vmatprep.subr.bf16.mxu1 %v3677_v15 }
 0x20b   :  { %2750 = vmatpush2.bf16.msra.mxu0 %v3627_v5 }
 0x20c   :  { %2751 = vmatprep.subr.bf16.mxu0 %v3632_v6 }
 0x20d   :  { %2791 = vmatpush2.bf16.msra.mxu1 %v3675_v21 }
 0x20e   :  { %2792 = vmatprep.subr.bf16.mxu1 %v3680_v30 }
 0x20f   :  { %2752 = vmatpush2.bf16.msra.mxu0 %v3630_v9 }
 0x210   :  { %2753 = vmatprep.subr.bf16.mxu0 %v3635_v14 }
 0x211   :  { %2793 = vmatpush2.bf16.msra.mxu1 %v3678_v34 }
 0x212   :  { %2794 = vmatprep.subr.bf16.mxu1 %v3683_v46 }
 0x213   :  { %2754 = vmatpush2.bf16.msra.mxu0 %v3633_v19 }
 0x214   :  { %2755 = vmatprep.subr.bf16.mxu0 %v3638_v20 }
 0x215   :  { %2795 = vmatpush2.bf16.msra.mxu1 %v3681_v48 }
 0x216   :  { %2796 = vmatprep.subr.bf16.mxu1 %v3686_v41 }
 0x217   :  { %2756 = vmatpush2.bf16.msra.mxu0 %v3636_v57 }
 0x219   :  { %2797 = vmatpush2.bf16.msra.mxu1 %v3684_v51  ;;  %v3194_v51 = vld [vmem:[#allocation2] ss:$0 sm:$0xff] }
 0x21a   :  { %v2105_v25 = vpop.f32.mrf.mxu0  ;;  %v2146_v28 = vpop.f32.mrf.mxu1 }
 0x21b   :  { %v2106_v27 = vadd.f32 %v2105_v25, %v2065_v59  ;;  %v2393_v25 = vld [vmem:[%s3987_s6] sm:$0x3] }
 0x21c   :  { %v2107_v29 = vpop.f32.mrf.mxu0  ;;  %v2148_v33 = vpop.f32.mrf.mxu1 }
 0x21d   :  { %v2147_v31 = vadd.f32 %v2146_v28, %v2106_v27  ;;  %v2108_v32 = vadd.f32 %v2107_v29, %v2067_v26  ;;  %v2811_v26 = vld [vmem:[%s3988_s7] sm:$0x3]  ;;  %v2398_v27 = vrot.slane %v2393_v25, %v3880_v40  ;;  %v2402_v28 = vrot.slane %v2393_v25, %v3888_v43 }
 0x21e   :  { %v2109_v35 = vpop.f32.mrf.mxu0  ;;  %v2150_v38 = vpop.f32.mrf.mxu1  ;;  %v2812_v29 = vunpack.c.l.bf16 %v2811_v26 }
 0x21f   :  { %v2317_v37 = vmul.f32 0.2, %v2147_v31  ;;  %v2149_v16 = vadd.f32 %v2148_v33, %v2108_v32 }
 0x220   :  { %v2110_v18 = vpop.f32.mrf.mxu0  ;;  %v2151_v47 = vpop.f32.mrf.mxu1  ;;  %v2817_v34 = vrot.slane %v2812_v29, %v3880_v40  ;;  %v2821_v35 = vrot.slane %v2812_v29, %v3885_v42 }
 0x221   :  { %v2318_v13 = vmul.f32 0.2, %v2149_v16  ;;  %v2321_v36 = vmax.f32 %v2147_v31, %v2317_v37 }
 0x222   :  { %v2827_v47 = vrot.slane %v2817_v34, %v3880_v40  ;;  %v2831_v48 = vrot.slane %v2821_v35, %v3880_v40 }
 0x223   :  { %v2322_v49 = vmax.f32 %v2149_v16, %v2318_v13  ;;  %v2325_v8 = vpack.c.bf16 %v2321_v36, %v2321_v36 }
 0x225   :  { %v2326_v50 = vpack.c.bf16 %v2322_v49, %v2322_v49 }
 0x227   :  { %2757 = vmatprep.mubr.bf16.mxu0 %v2326_v50 }
 0x228   :  { %2758 = vmatmul.mubr.bf16.vlgmr.msra.gmra.mxu0 %v2325_v8 }
 0x25a   :  { %v2187_v52 = vpop.f32.mrf.mxu0 }
 0x25b   :  { %v2228_v53 = vpop.f32.mrf.mxu1  ;;  %v2188_v63 = vadd.f32 %v2187_v52, %v700_v61 }
 0x25c   :  { %v2189_v54 = vpop.f32.mrf.mxu0 }
 0x25d   :  { %v2230_v12 = vpop.f32.mrf.mxu1  ;;  %v2190_v0 = vadd.f32 %v2189_v54, %v704_v62  ;;  %v2229_v1 = vadd.f32 %v2228_v53, %v2188_v63 }
 0x25e   :  { %v2191_v55 = vpop.f32.mrf.mxu0 }
 0x25f   :  { %v2232_v56 = vpop.f32.mrf.mxu1  ;;  %v2231_v3 = vadd.f32 %v2230_v12, %v2190_v0 }
 0x260   :  { %v2192_v58 = vpop.f32.mrf.mxu0 }
 0x261   :  { %v2233_v60 = vpop.f32.mrf.mxu1 }
 0x29a   :  { %v2269_v2 = vpop.f32.mrf.mxu0 }
 0x29b   :  { %v2270_v4 = vadd.f32 %v2269_v2, %v2229_v1  ;;  %v2310_v5 = vpop.f32.mrf.mxu1 }
 0x29c   :  { %v2271_v6 = vpop.f32.mrf.mxu0 }
 0x29d   :  { %v2311_v10 = vadd.f32 %v2310_v5, %v2270_v4  ;;  %v2272_v7 = vadd.f32 %v2271_v6, %v2231_v3  ;;  %v2312_v9 = vpop.f32.mrf.mxu1 }
 0x29e   :  { %v2273_v14 = vpop.f32.mrf.mxu0 }
 0x29f   :  { %v2319_v11 = vmul.f32 0.2, %v2311_v10  ;;  %v2313_v15 = vadd.f32 %v2312_v9, %v2272_v7  ;;  %v2314_v19 = vpop.f32.mrf.mxu1 }
 0x2a0   :  { %v2274_v20 = vpop.f32.mrf.mxu0 }
 0x2a1   :  { %v2320_v21 = vmul.f32 0.2, %v2313_v15  ;;  %v2315_v45 = vpop.f32.mrf.mxu1  ;;  %v2323_v39 = vmax.f32 %v2311_v10, %v2319_v11 }
 0x2a3   :  { %v2324_v44 = vmax.f32 %v2313_v15, %v2320_v21  ;;  %v2327_v22 = vpack.c.bf16 %v2323_v39, %v2323_v39 }
 0x2a5   :  { %v2328_v17 = vpack.c.bf16 %v2324_v44, %v2324_v44 }
 0x2a7   :  { %2798 = vmatprep.mubr.bf16.mxu1 %v2328_v17 }
 0x2a8   :  { %2799 = vmatmul.mubr.bf16.vlgmr.msra.gmra.mxu1 %v2327_v22 }
 0x2e8   :  { %v2759_v57 = vpop.f32.mrf.mxu0 }
 0x2e9   :  { %v2760_v30 = vadd.f32 %v2759_v57, %v2398_v27 }
 0x2ea   :  { %v2761_v23 = vpop.f32.mrf.mxu0 }
 0x2eb   :  { %v2762_v32 = vadd.f32 %v2761_v23, %v2402_v28 }
 0x2ec   :  { %v2763_v24 = vpop.f32.mrf.mxu0 }
 0x2ee   :  { %v2764_v59 = vpop.f32.mrf.mxu0 }
 0x368   :  { %v2800_v31 = vpop.f32.mrf.mxu1 }
 0x369   :  { %v2801_v33 = vadd.f32 %v2800_v31, %v2760_v30 }
 0x36a   :  { %v2802_v37 = vpop.f32.mrf.mxu1 }
 0x36b   :  { %v2807_v16 = vmul.f32 0.2, %v2801_v33  ;;  %v2803_v38 = vadd.f32 %v2802_v37, %v2762_v32 }
 0x36c   :  { %v2804_v18 = vpop.f32.mrf.mxu1 }
 0x36d   :  { %v2809_v46 = vmax.f32 %v2801_v33, %v2807_v16  ;;  %v2808_v13 = vmul.f32 0.2, %v2803_v38 }
 0x36e   :  { %v2805_v43 = vpop.f32.mrf.mxu1 }
 0x36f   :  { %v2810_v36 = vmax.f32 %v2803_v38, %v2808_v13  ;;  %v2832_v49 = vmul.f32 %v2827_v47, %v2809_v46 }
 0x371   :  { %v2833_v41 = vmul.f32 %v2831_v48, %v2810_v36 }
 0x373   :  { %v2834_v50 = vadd.f32 %v2833_v41, %v2832_v49 }
 0x375   :  { %2835 = vadd.xlane.f32.xlu0 %v2834_v50 }
 0x3fe   :  { %v2836_v8 = vpop.xlane.xlu0 %2835 }
 0x3ff   :  { %v2844_v42 = vadd.f32 %v3194_v51, %v2836_v8 }
 0x401   :  { %2846 = vst.msk [vmem:[%s3990_s9] sm:$0xff] %vm2845_vm1, %v2844_v42 }
 0x402   :  { %2851 = vsyncpa [#allocation4], 1 }
 0x403   :  { %2852 = vsyncpa [#allocation6], 1 }
 0x404   :  { %2853 = vsyncpa [#allocation9], 1 }

</bundles_post_ra>
